<compile_context>
chip_gen: v6e
topology: v6e:2x2x1
jax: 0.10.0
libtpu: 0.0.40
codegen_flags: <defaults>
</compile_context>

<pallas_src>
import functools

import numpy as np
import jax
import jax.numpy as jnp
from jax.experimental import pallas as pl
from jax.experimental.pallas import tpu as pltpu

NBLOCKS = 2            # number of residual blocks (PyTorch default)
BN_EPS = 1e-5          # torch.nn.BatchNorm1d default eps
LANE = 128
TILE_MAX = 16384       # lane-axis rows per grid step (bf16 acts: ~6.5 MiB VMEM/stage)
VMEM_LIMIT = 32 * 1024 * 1024   # safe on v5e/v6e/v7x for the tile sizes above


def _round_up(x, m):
    return (x + m - 1) // m * m


def _cdiv(a, b):
    return (a + b - 1) // b


def _tiling(n_rows, tile_max=TILE_MAX):
    """Pick (tile, grid_n, n_pad).

    Padding is decoupled from tile_max (waste <= ~grid_n*128 rows), only the
    LAST tile can be ragged, and grid_n >= 2 whenever N allows it so the
    "parallel" grid axis spans both v7x TensorCores.
    """
    n128 = _round_up(max(n_rows, 1), LANE)
    m = n128 // LANE
    g_target = max(_cdiv(n128, tile_max), min(2, m))
    tile = LANE * _cdiv(m, g_target)
    grid_n = _cdiv(n128, tile)
    return tile, grid_n, tile * grid_n


# --------------------------------------------------------------------------
# One MLP stage:  y = W @ relu(BN(x)) + b  [+ residual]   (+ partial BN stats)
# Layout: x (F_in, T), y (F_out, T)  -- T rows on the lane axis.
# --------------------------------------------------------------------------
def _stage_kernel(*refs, has_bn, fma_matmul, has_residual, compute_stats,
                  post_relu, inv_n, n_valid_last, tile):
    it = iter(refs)
    stats_in_ref = gamma_ref = beta_ref = None
    if has_bn:
        stats_in_ref, gamma_ref, beta_ref = next(it), next(it), next(it)
    w_ref = next(it)
    b_ref = next(it)
    x_ref = next(it)
    res_ref = next(it) if has_residual else None
    y_ref = next(it)
    stats_out_ref = next(it) if compute_stats else None

    x = x_ref[...].astype(jnp.float32)                       # (F_in, T)

    if has_bn:
        # Fold the previous stage's per-tile partial sums into BN scale/shift
        # right here (no host-side glue between pallas_calls).  The reduction
        # is tiny (grid_n x F x 2), rsqrt goes to the EUP, and recomputing it
        # per tile keeps it megacore-safe.
        tot = jnp.sum(stats_in_ref[...], axis=0)             # (F_in, 2)
        mean = tot[:, 0:1] * inv_n                           # (F_in, 1)
        var = jnp.maximum(tot[:, 1:2] * inv_n - mean * mean, 0.0)
        scale = gamma_ref[...] * jax.lax.rsqrt(var + BN_EPS)
        shift = beta_ref[...] - mean * scale
        x = jnp.maximum(x * scale + shift, 0.0)

    w = w_ref[...]                                           # (F_out, F_in) f32
    if fma_matmul:
        # Degenerate contraction (K=4): VPU broadcast-FMAs, skip the MXU.
        y = jnp.broadcast_to(b_ref[...], (w.shape[0], x.shape[1]))
        for k in range(w.shape[1]):
            y = y + w[:, k:k + 1] * x[k:k + 1, :]
    else:
        y = jnp.dot(w, x, preferred_element_type=jnp.float32) + b_ref[...]

    if has_residual:
        y = y + res_ref[...].astype(jnp.float32)
    if post_relu:
        y = jnp.maximum(y, 0.0)
    y_ref[...] = y.astype(y_ref.dtype)                       # bf16 store (perf path)

    if compute_stats:
        # Fused single-sweep partial stats (sum, sum-of-squares) for the next BN.
        def _emit(ym):
            s = jnp.sum(ym, axis=1, keepdims=True)            # (F_out, 1)
            ss = jnp.sum(ym * y, axis=1, keepdims=True)       # (F_out, 1)
            stats_out_ref[...] = jnp.concatenate([s, ss], axis=1)[None]

        if n_valid_last < tile:        # static: a ragged last tile exists
            last = pl.num_programs(0) - 1
            i = pl.program_id(0)

            @pl.when(i != last)
            def _():
                _emit(y)

            @pl.when(i == last)
            def _():
                col = jax.lax.broadcasted_iota(jnp.int32, (1, tile), 1)
                _emit(jnp.where(col < n_valid_last, y, 0.0))
        else:
            _emit(y)


def _run_stage(x, w, b, *, stats=None, gamma=None, beta=None, residual=None,
               compute_stats=True, post_relu=False, fma_matmul=False,
               n_rows, tile, out_dtype):
    f_out, f_in = w.shape
    n_pad = x.shape[1]
    grid_n = n_pad // tile

    def const(a):
        return pl.BlockSpec(a.shape, lambda i, n=a.ndim: (0,) * n)

    def row_tile(rows):
        return pl.BlockSpec((rows, tile), lambda i: (0, i))

    args, in_specs = [], []
    if stats is not None:
        args += [stats, gamma, beta]
        in_specs += [const(stats), const(gamma), const(beta)]
    args += [w, b]
    in_specs += [const(w), const(b)]
    args.append(x)
    in_specs.append(row_tile(f_in))
    aliases = {}
    if residual is not None:
        aliases = {len(args): 0}        # write the new h in place of the old h
        args.append(residual)
        in_specs.append(row_tile(f_out))

    out_shape = [jax.ShapeDtypeStruct((f_out, n_pad), out_dtype)]
    out_specs = [row_tile(f_out)]
    if compute_stats:
        out_shape.append(jax.ShapeDtypeStruct((grid_n, f_out, 2), jnp.float32))
        out_specs.append(pl.BlockSpec((1, f_out, 2), lambda i: (i, 0, 0)))

    kernel = functools.partial(
        _stage_kernel,
        has_bn=stats is not None, fma_matmul=fma_matmul,
        has_residual=residual is not None, compute_stats=compute_stats,
        post_relu=post_relu, inv_n=1.0 / n_rows,
        n_valid_last=n_rows - (grid_n - 1) * tile, tile=tile)

    out = pl.pallas_call(
        kernel,
        out_shape=tuple(out_shape),
        grid=(grid_n,),
        in_specs=in_specs,
        out_specs=tuple(out_specs),
        input_output_aliases=aliases,
        compiler_params=pltpu.CompilerParams(
            dimension_semantics=("parallel",),
            vmem_limit_bytes=VMEM_LIMIT),
    )(*args)
    if compute_stats:
        return out[0], out[1]
    return out[0], None


# --------------------------------------------------------------------------
# ResMLP forward: In_layer -> ReLU -> [ResBlock]*NBLOCKS -> BN -> ReLU -> Out
# --------------------------------------------------------------------------
def resmlp_forward(rr, params, *, act_dtype=jnp.bfloat16, tile_max=TILE_MAX):
    """rr: (N, 2*nb_ft) float32 -> (N, G^2) float32."""
    n_rows = rr.shape[0]
    tile, _, n_pad = _tiling(n_rows, tile_max)

    x = jnp.pad(rr.T.astype(jnp.float32), ((0, 0), (0, n_pad - n_rows)))

    # In_layer + ReLU (VPU FMA path, K=4), partial stats for the first BN.
    h, st = _run_stage(x, params["w_inT"], params["b_in"], post_relu=True,
                       fma_matmul=True, n_rows=n_rows, tile=tile,
                       out_dtype=act_dtype)
    bn = 0
    for k in range(NBLOCKS):
        z, st = _run_stage(h, params["waT"][k], params["ba"][k],
                           stats=st, gamma=params["gamma"][bn],
                           beta=params["beta"][bn],
                           n_rows=n_rows, tile=tile, out_dtype=act_dtype)
        bn += 1
        h, st = _run_stage(z, params["wbT"][k], params["bb"][k],
                           stats=st, gamma=params["gamma"][bn],
                           beta=params["beta"][bn], residual=h,
                           n_rows=n_rows, tile=tile, out_dtype=act_dtype)
        bn += 1
    pred_t, _ = _run_stage(h, params["w_outT"], params["b_out"],
                           stats=st, gamma=params["gamma"][bn],
                           beta=params["beta"][bn], compute_stats=False,
                           n_rows=n_rows, tile=tile, out_dtype=jnp.float32)
    return pred_t[:, :n_rows].T                      # (N, G^2) float32


def init_params(key, input_size, hidden_size, output_size, nblocks=NBLOCKS):
    """Kaiming-uniform (fan_in, relu) weights (stored transposed, (out,in)),
       zero biases, gamma=1 / beta=0 for every BatchNorm."""
    def kaiming(k, fan_in, shape):
        bound = (6.0 / fan_in) ** 0.5                # sqrt(2) * sqrt(3/fan_in)
        return jax.random.uniform(k, shape, jnp.float32, -bound, bound)

    keys = jax.random.split(key, 2 + 2 * nblocks)
    w_inT = kaiming(keys[0], input_size, (hidden_size, input_size))
    waT = jnp.stack([kaiming(keys[1 + 2 * k], hidden_size,
                             (hidden_size, hidden_size)) for k in range(nblocks)])
    wbT = jnp.stack([kaiming(keys[2 + 2 * k], hidden_size,
                             (hidden_size, hidden_size)) for k in range(nblocks)])
    w_outT = kaiming(keys[1 + 2 * nblocks], hidden_size,
                     (output_size, hidden_size))
    n_bn = 2 * nblocks + 1
    return dict(
        w_inT=w_inT, b_in=jnp.zeros((hidden_size, 1), jnp.float32),
        waT=waT, ba=jnp.zeros((nblocks, hidden_size, 1), jnp.float32),
        wbT=wbT, bb=jnp.zeros((nblocks, hidden_size, 1), jnp.float32),
        gamma=jnp.ones((n_bn, hidden_size, 1), jnp.float32),
        beta=jnp.zeros((n_bn, hidden_size, 1), jnp.float32),
        w_outT=w_outT, b_out=jnp.zeros((output_size, 1), jnp.float32))


def net_forward(x, params, *, grid_size, act_dtype=jnp.bfloat16,
                tile_max=TILE_MAX):
    """Equivalent of Net.forward (the torch `device` arg is moot on TPU)."""
    bs, nb_var, nb_ft = x.shape
    tri_r, tri_c = np.triu_indices(nb_var, k=1)        # static
    npairs = tri_r.shape[0]

    # Pair gather: rr[b*npairs + p] = concat(x[b, i_p], x[b, j_p])
    rr = jnp.concatenate([x[:, tri_r], x[:, tri_c]], axis=-1)
    rr = rr.reshape(bs * npairs, 2 * nb_ft)

    pred = resmlp_forward(rr, params, act_dtype=act_dtype, tile_max=tile_max)
    pred = pred.reshape(bs, npairs, grid_size, grid_size)
    pred_t = jnp.swapaxes(pred, 2, 3)

    # Single static gather instead of two symmetric scatters.
    stacked = jnp.concatenate(
        [jnp.zeros((bs, 1, grid_size, grid_size), jnp.float32), pred, pred_t],
        axis=1)                                         # (bs, 1+2*npairs, G, G)
    idx = np.zeros((nb_var, nb_var), np.int32)
    idx[tri_r, tri_c] = 1 + np.arange(npairs, dtype=np.int32)
    idx[tri_c, tri_r] = 1 + npairs + np.arange(npairs, dtype=np.int32)
    out = jnp.take(stacked, jnp.asarray(idx.reshape(-1)), axis=1)
    return out.reshape(bs, nb_var, nb_var, grid_size, grid_size)


# --------------------------------------------------------------------------
# Pure-JAX reference (same math, plain layout, all-f32) for correctness.
# --------------------------------------------------------------------------
def ref_forward(x, params, *, grid_size):
    bs, nb_var, nb_ft = x.shape
    tri_r, tri_c = np.triu_indices(nb_var, k=1)
    rr = jnp.concatenate([x[:, tri_r], x[:, tri_c]], axis=-1)
    rr = rr.reshape(-1, 2 * nb_ft)

    def bn(v, g, b):
        m = v.mean(0)
        var = ((v - m) ** 2).mean(0)
        return (v - m) * jax.lax.rsqrt(var + BN_EPS) * g + b

    h = jnp.maximum(rr @ params["w_inT"].T + params["b_in"][:, 0], 0.0)
    bi = 0
    for k in range(NBLOCKS):
        z = jnp.maximum(bn(h, params["gamma"][bi][:, 0],
                           params["beta"][bi][:, 0]), 0.0)
        z = z @ params["waT"][k].T + params["ba"][k][:, 0]
        bi += 1
        z = jnp.maximum(bn(z, params["gamma"][bi][:, 0],
                           params["beta"][bi][:, 0]), 0.0)
        z = z @ params["wbT"][k].T + params["bb"][k][:, 0]
        bi += 1
        h = h + z
    z = jnp.maximum(bn(h, params["gamma"][bi][:, 0],
                       params["beta"][bi][:, 0]), 0.0)
    pred = z @ params["w_outT"].T + params["b_out"][:, 0]
    pred = pred.reshape(bs, -1, grid_size, grid_size)
    out = jnp.zeros((bs, nb_var, nb_var, grid_size, grid_size), jnp.float32)
    out = out.at[:, tri_r, tri_c].set(pred)
    out = out.at[:, tri_c, tri_r].set(jnp.swapaxes(pred, 2, 3))
    return out


if __name__ == "__main__":
    key = jax.random.PRNGKey(0)
    bs, nb_var, feature_size = 2, 8, 2
    grid_size, hidden_size = 4, 32
    input_size = 2 * 1 * feature_size                   # 2 * embedding_dim * feature_size

    pkey, xkey = jax.random.split(key)
    params = init_params(pkey, input_size, hidden_size, grid_size ** 2)
    x = jax.random.normal(xkey, (bs, nb_var, feature_size), jnp.float32)

    ref = ref_forward(x, params, grid_size=grid_size)

    # Tight check with f32 activations everywhere (same kernels, f32 storage).
    fwd32 = jax.jit(functools.partial(net_forward, grid_size=grid_size,
                                      act_dtype=jnp.float32))
    out32 = fwd32(x, params)
    jax.block_until_ready(out32)
    assert out32.shape == (bs, nb_var, nb_var, grid_size, grid_size)
    err32 = float(jnp.max(jnp.abs(out32 - ref)))
    assert err32 < 1e-3, f"f32-activation path max abs err: {err32}"

    # Default perf path: bf16 inter-stage activations (f32 math in-kernel).
    fwd = jax.jit(functools.partial(net_forward, grid_size=grid_size))
    out = fwd(x, params)
    jax.block_until_ready(out)
    assert out.shape == (bs, nb_var, nb_var, grid_size, grid_size)
    assert out.dtype == jnp.float32
    err = float(jnp.max(jnp.abs(out - ref)))
    assert err < 1e-1, f"bf16-activation path max abs err: {err}"

    print("KERNEL_OK")
</pallas_src>

<mosaic_0001>
module attributes {stable_mosaic.version = 11 : i64} {
  func.func @_stage_kernel(%arg0: i32, %arg1: memref<1x32x2xf32, #tpu.memory_space<vmem>>, %arg2: memref<32x1xf32, #tpu.memory_space<vmem>>, %arg3: memref<32x1xf32, #tpu.memory_space<vmem>>, %arg4: memref<32x32xf32, #tpu.memory_space<vmem>>, %arg5: memref<32x1xf32, #tpu.memory_space<vmem>>, %arg6: memref<32x128xf32, #tpu.memory_space<vmem>>, %arg7: memref<32x128xf32, #tpu.memory_space<vmem>>, %arg8: memref<1x32x2xf32, #tpu.memory_space<vmem>>) attributes {dimension_semantics = [#tpu.dimension_semantics<parallel>], iteration_bounds = array<i64: 1>, scalar_prefetch = 0 : i64, scratch_operands = 0 : i64, tpu.core_type = #tpu.core_type<tc>, window_params = [{pipeline_mode = #tpu.pipeline_mode<synchronous>, transform_indices = @transform_0, window_bounds = array<i64: 1, 32, 2>}, {pipeline_mode = #tpu.pipeline_mode<synchronous>, transform_indices = @transform_1, window_bounds = array<i64: 32, 1>}, {pipeline_mode = #tpu.pipeline_mode<synchronous>, transform_indices = @transform_2, window_bounds = array<i64: 32, 1>}, {pipeline_mode = #tpu.pipeline_mode<synchronous>, transform_indices = @transform_3, window_bounds = array<i64: 32, 32>}, {pipeline_mode = #tpu.pipeline_mode<synchronous>, transform_indices = @transform_4, window_bounds = array<i64: 32, 1>}, {transform_indices = @transform_5, window_bounds = array<i64: 32, 128>}, {transform_indices = @transform_6, window_bounds = array<i64: 32, 128>}, {transform_indices = @transform_7, window_bounds = array<i64: 1, 32, 2>}]} {
    %c0 = arith.constant 0 : index
    %c0_0 = arith.constant 0 : index
    %0 = vector.load %arg6[%c0, %c0_0] : memref<32x128xf32, #tpu.memory_space<vmem>>, vector<32x128xf32>
    %c0_1 = arith.constant 0 : index
    %c0_2 = arith.constant 0 : index
    %c0_3 = arith.constant 0 : index
    %1 = vector.load %arg1[%c0_1, %c0_2, %c0_3] : memref<1x32x2xf32, #tpu.memory_space<vmem>>, vector<1x32x2xf32>
    %cst = arith.constant dense<0.000000e+00> : vector<32x2xf32>
    %2 = vector.multi_reduction <add>, %1, %cst [0] : vector<1x32x2xf32> to vector<32x2xf32>
    %3 = vector.extract_strided_slice %2 {offsets = [0, 0], sizes = [32, 1], strides = [1, 1]} : vector<32x2xf32> to vector<32x1xf32>
    %cst_4 = arith.constant 0.0178571437 : f32
    %4 = vector.broadcast %cst_4 : f32 to vector<32x1xf32>
    %5 = arith.mulf %3, %4 : vector<32x1xf32>
    %6 = vector.extract_strided_slice %2 {offsets = [0, 1], sizes = [32, 1], strides = [1, 1]} : vector<32x2xf32> to vector<32x1xf32>
    %cst_5 = arith.constant 0.0178571437 : f32
    %7 = vector.broadcast %cst_5 : f32 to vector<32x1xf32>
    %8 = arith.mulf %6, %7 : vector<32x1xf32>
    %9 = arith.mulf %5, %5 : vector<32x1xf32>
    %10 = arith.subf %8, %9 : vector<32x1xf32>
    %cst_6 = arith.constant 0.000000e+00 : f32
    %11 = vector.broadcast %cst_6 : f32 to vector<32x1xf32>
    %12 = arith.maximumf %10, %11 : vector<32x1xf32>
    %c0_7 = arith.constant 0 : index
    %c0_8 = arith.constant 0 : index
    %13 = vector.load %arg2[%c0_7, %c0_8] : memref<32x1xf32, #tpu.memory_space<vmem>>, vector<32x1xf32>
    %cst_9 = arith.constant 9.99999974E-6 : f32
    %14 = vector.broadcast %cst_9 : f32 to vector<32x1xf32>
    %15 = arith.addf %12, %14 : vector<32x1xf32>
    %16 = math.rsqrt %15 : vector<32x1xf32>
    %17 = arith.mulf %13, %16 : vector<32x1xf32>
    %c0_10 = arith.constant 0 : index
    %c0_11 = arith.constant 0 : index
    %18 = vector.load %arg3[%c0_10, %c0_11] : memref<32x1xf32, #tpu.memory_space<vmem>>, vector<32x1xf32>
    %19 = arith.mulf %5, %17 : vector<32x1xf32>
    %20 = arith.subf %18, %19 : vector<32x1xf32>
    %21 = vector.broadcast %17 : vector<32x1xf32> to vector<32x128xf32>
    %22 = arith.mulf %0, %21 : vector<32x128xf32>
    %23 = vector.broadcast %20 : vector<32x1xf32> to vector<32x128xf32>
    %24 = arith.addf %22, %23 : vector<32x128xf32>
    %cst_12 = arith.constant 0.000000e+00 : f32
    %25 = vector.broadcast %cst_12 : f32 to vector<32x128xf32>
    %26 = arith.maximumf %24, %25 : vector<32x128xf32>
    %c0_13 = arith.constant 0 : index
    %c0_14 = arith.constant 0 : index
    %27 = vector.load %arg4[%c0_13, %c0_14] : memref<32x32xf32, #tpu.memory_space<vmem>>, vector<32x32xf32>
    %cst_15 = arith.constant dense<0.000000e+00> : vector<32x128xf32>
    %28 = tpu.matmul %27, %26, %cst_15 {dimension_numbers = #tpu.dot_dimension_numbers<[1], [0], [0], [1], [0, 0, 1, 1], [], []>} : vector<32x32xf32>, vector<32x128xf32>, vector<32x128xf32> -> vector<32x128xf32>
    %c0_16 = arith.constant 0 : index
    %c0_17 = arith.constant 0 : index
    %29 = vector.load %arg5[%c0_16, %c0_17] : memref<32x1xf32, #tpu.memory_space<vmem>>, vector<32x1xf32>
    %30 = vector.broadcast %29 : vector<32x1xf32> to vector<32x128xf32>
    %31 = arith.addf %28, %30 : vector<32x128xf32>
    %c0_18 = arith.constant 0 : index
    %c0_19 = arith.constant 0 : index
    %32 = vector.load %arg7[%c0_18, %c0_19] : memref<32x128xf32, #tpu.memory_space<vmem>>, vector<32x128xf32>
    tpu.vector_store %arg7[%c0_18, %c0_19], %31 {strides = array<i32>} : memref<32x128xf32, #tpu.memory_space<vmem>>, vector<32x128xf32>,
    %c0_i32 = arith.constant 0 : i32
    %33 = arith.cmpi ne, %arg0, %c0_i32 : i32
    %34 = arith.extui %33 : i1 to i32
    %c0_i32_20 = arith.constant 0 : i32
    %35 = arith.cmpi ne, %34, %c0_i32_20 : i32
    scf.if %35 {
      %cst_23 = arith.constant dense<0.000000e+00> : vector<32xf32>
      %39 = vector.multi_reduction <add>, %31, %cst_23 [1] : vector<32x128xf32> to vector<32xf32>
      %40 = vector.shape_cast %39 : vector<32xf32> to vector<32x1xf32>
      %41 = arith.mulf %31, %31 : vector<32x128xf32>
      %cst_24 = arith.constant dense<0.000000e+00> : vector<32xf32>
      %42 = vector.multi_reduction <add>, %41, %cst_24 [1] : vector<32x128xf32> to vector<32xf32>
      %43 = vector.shape_cast %42 : vector<32xf32> to vector<32x1xf32>
      %44 = tpu.concatenate %40, %43 in 1 : vector<32x1xf32>, vector<32x1xf32> -> vector<32x2xf32>
      %45 = vector.shape_cast %44 : vector<32x2xf32> to vector<1x32x2xf32>
      %c0_25 = arith.constant 0 : index
      %c0_26 = arith.constant 0 : index
      %c0_27 = arith.constant 0 : index
      %46 = vector.load %arg8[%c0_25, %c0_26, %c0_27] : memref<1x32x2xf32, #tpu.memory_space<vmem>>, vector<1x32x2xf32>
      tpu.vector_store %arg8[%c0_25, %c0_26, %c0_27], %45 {strides = array<i32>} : memref<1x32x2xf32, #tpu.memory_space<vmem>>, vector<1x32x2xf32>,
    } else {
    }
    %c0_i32_21 = arith.constant 0 : i32
    %36 = arith.cmpi eq, %arg0, %c0_i32_21 : i32
    %37 = arith.extui %36 : i1 to i32
    %c0_i32_22 = arith.constant 0 : i32
    %38 = arith.cmpi ne, %37, %c0_i32_22 : i32
    scf.if %38 {
      %39 = tpu.iota {dimensions = array<i32: 1>} : vector<1x128xi32>
      %c56_i32 = arith.constant 56 : i32
      %40 = vector.broadcast %c56_i32 : i32 to vector<1x128xi32>
      %41 = arith.cmpi slt, %39, %40 : vector<1x128xi32>
      %cst_23 = arith.constant 0.000000e+00 : f32
      %42 = vector.shape_cast %41 : vector<1x128xi1> to vector<1x128xi1>
      %43 = vector.broadcast %42 : vector<1x128xi1> to vector<32x128xi1>
      %44 = vector.broadcast %cst_23 : f32 to vector<32x128xf32>
      %45 = arith.select %43, %31, %44 : vector<32x128xi1>, vector<32x128xf32>
      %cst_24 = arith.constant dense<0.000000e+00> : vector<32xf32>
      %46 = vector.multi_reduction <add>, %45, %cst_24 [1] : vector<32x128xf32> to vector<32xf32>
      %47 = vector.shape_cast %46 : vector<32xf32> to vector<32x1xf32>
      %48 = arith.mulf %45, %31 : vector<32x128xf32>
      %cst_25 = arith.constant dense<0.000000e+00> : vector<32xf32>
      %49 = vector.multi_reduction <add>, %48, %cst_25 [1] : vector<32x128xf32> to vector<32xf32>
      %50 = vector.shape_cast %49 : vector<32xf32> to vector<32x1xf32>
      %51 = tpu.concatenate %47, %50 in 1 : vector<32x1xf32>, vector<32x1xf32> -> vector<32x2xf32>
      %52 = vector.shape_cast %51 : vector<32x2xf32> to vector<1x32x2xf32>
      %c0_26 = arith.constant 0 : index
      %c0_27 = arith.constant 0 : index
      %c0_28 = arith.constant 0 : index
      %53 = vector.load %arg8[%c0_26, %c0_27, %c0_28] : memref<1x32x2xf32, #tpu.memory_space<vmem>>, vector<1x32x2xf32>
      tpu.vector_store %arg8[%c0_26, %c0_27, %c0_28], %52 {strides = array<i32>} : memref<1x32x2xf32, #tpu.memory_space<vmem>>, vector<1x32x2xf32>,
    } else {
    }
    return
  }
  func.func @transform_0(%arg0: i32) -> (i32, i32, i32) {
    %c0_i32 = arith.constant 0 : i32
    %c0_i32_0 = arith.constant 0 : i32
    %c0_i32_1 = arith.constant 0 : i32
    %c0_i32_2 = arith.constant 0 : i32
    return %c0_i32, %c0_i32_0, %c0_i32_1 : i32, i32, i32
  }
  func.func @transform_1(%arg0: i32) -> (i32, i32) {
    %c0_i32 = arith.constant 0 : i32
    %c0_i32_0 = arith.constant 0 : i32
    %c0_i32_1 = arith.constant 0 : i32
    return %c0_i32, %c0_i32_0 : i32, i32
  }
  func.func @transform_2(%arg0: i32) -> (i32, i32) {
    %c0_i32 = arith.constant 0 : i32
    %c0_i32_0 = arith.constant 0 : i32
    %c0_i32_1 = arith.constant 0 : i32
    return %c0_i32, %c0_i32_0 : i32, i32
  }
  func.func @transform_3(%arg0: i32) -> (i32, i32) {
    %c0_i32 = arith.constant 0 : i32
    %c0_i32_0 = arith.constant 0 : i32
    %c0_i32_1 = arith.constant 0 : i32
    return %c0_i32, %c0_i32_0 : i32, i32
  }
  func.func @transform_4(%arg0: i32) -> (i32, i32) {
    %c0_i32 = arith.constant 0 : i32
    %c0_i32_0 = arith.constant 0 : i32
    %c0_i32_1 = arith.constant 0 : i32
    return %c0_i32, %c0_i32_0 : i32, i32
  }
  func.func @transform_5(%arg0: i32) -> (i32, i32) {
    %c0_i32 = arith.constant 0 : i32
    %c0_i32_0 = arith.constant 0 : i32
    return %c0_i32, %arg0 : i32, i32
  }
  func.func @transform_6(%arg0: i32) -> (i32, i32) {
    %c0_i32 = arith.constant 0 : i32
    %c0_i32_0 = arith.constant 0 : i32
    return %c0_i32, %arg0 : i32, i32
  }
  func.func @transform_7(%arg0: i32) -> (i32, i32, i32) {
    %c0_i32 = arith.constant 0 : i32
    %c0_i32_0 = arith.constant 0 : i32
    %c0_i32_1 = arith.constant 0 : i32
    return %arg0, %c0_i32, %c0_i32_0 : i32, i32, i32
  }
}

module attributes {stable_mosaic.version = 11 : i64} {
  func.func @_stage_kernel(%arg0: i32, %arg1: memref<32x4xf32, #tpu.memory_space<vmem>>, %arg2: memref<32x1xf32, #tpu.memory_space<vmem>>, %arg3: memref<4x128xf32, #tpu.memory_space<vmem>>, %arg4: memref<32x128xf32, #tpu.memory_space<vmem>>, %arg5: memref<1x32x2xf32, #tpu.memory_space<vmem>>) attributes {dimension_semantics = [#tpu.dimension_semantics<parallel>], iteration_bounds = array<i64: 1>, scalar_prefetch = 0 : i64, scratch_operands = 0 : i64, tpu.core_type = #tpu.core_type<tc>, window_params = [{pipeline_mode = #tpu.pipeline_mode<synchronous>, transform_indices = @transform_0, window_bounds = array<i64: 32, 4>}, {pipeline_mode = #tpu.pipeline_mode<synchronous>, transform_indices = @transform_1, window_bounds = array<i64: 32, 1>}, {transform_indices = @transform_2, window_bounds = array<i64: 4, 128>}, {transform_indices = @transform_3, window_bounds = array<i64: 32, 128>}, {transform_indices = @transform_4, window_bounds = array<i64: 1, 32, 2>}]} {
    %c0 = arith.constant 0 : index
    %c0_0 = arith.constant 0 : index
    %0 = vector.load %arg3[%c0, %c0_0] : memref<4x128xf32, #tpu.memory_space<vmem>>, vector<4x128xf32>
    %c0_1 = arith.constant 0 : index
    %c0_2 = arith.constant 0 : index
    %1 = vector.load %arg1[%c0_1, %c0_2] : memref<32x4xf32, #tpu.memory_space<vmem>>, vector<32x4xf32>
    %c0_3 = arith.constant 0 : index
    %c0_4 = arith.constant 0 : index
    %2 = vector.load %arg2[%c0_3, %c0_4] : memref<32x1xf32, #tpu.memory_space<vmem>>, vector<32x1xf32>
    %3 = vector.shape_cast %2 : vector<32x1xf32> to vector<32x1xf32>
    %4 = vector.broadcast %3 : vector<32x1xf32> to vector<32x128xf32>
    %5 = vector.extract_strided_slice %1 {offsets = [0, 0], sizes = [32, 1], strides = [1, 1]} : vector<32x4xf32> to vector<32x1xf32>
    %6 = vector.extract_strided_slice %0 {offsets = [0, 0], sizes = [1, 128], strides = [1, 1]} : vector<4x128xf32> to vector<1x128xf32>
    %7 = vector.broadcast %5 : vector<32x1xf32> to vector<32x128xf32>
    %8 = vector.broadcast %6 : vector<1x128xf32> to vector<32x128xf32>
    %9 = arith.mulf %7, %8 : vector<32x128xf32>
    %10 = arith.addf %4, %9 : vector<32x128xf32>
    %11 = vector.extract_strided_slice %1 {offsets = [0, 1], sizes = [32, 1], strides = [1, 1]} : vector<32x4xf32> to vector<32x1xf32>
    %12 = vector.extract_strided_slice %0 {offsets = [1, 0], sizes = [1, 128], strides = [1, 1]} : vector<4x128xf32> to vector<1x128xf32>
    %13 = vector.broadcast %11 : vector<32x1xf32> to vector<32x128xf32>
    %14 = vector.broadcast %12 : vector<1x128xf32> to vector<32x128xf32>
    %15 = arith.mulf %13, %14 : vector<32x128xf32>
    %16 = arith.addf %10, %15 : vector<32x128xf32>
    %17 = vector.extract_strided_slice %1 {offsets = [0, 2], sizes = [32, 1], strides = [1, 1]} : vector<32x4xf32> to vector<32x1xf32>
    %18 = vector.extract_strided_slice %0 {offsets = [2, 0], sizes = [1, 128], strides = [1, 1]} : vector<4x128xf32> to vector<1x128xf32>
    %19 = vector.broadcast %17 : vector<32x1xf32> to vector<32x128xf32>
    %20 = vector.broadcast %18 : vector<1x128xf32> to vector<32x128xf32>
    %21 = arith.mulf %19, %20 : vector<32x128xf32>
    %22 = arith.addf %16, %21 : vector<32x128xf32>
    %23 = vector.extract_strided_slice %1 {offsets = [0, 3], sizes = [32, 1], strides = [1, 1]} : vector<32x4xf32> to vector<32x1xf32>
    %24 = vector.extract_strided_slice %0 {offsets = [3, 0], sizes = [1, 128], strides = [1, 1]} : vector<4x128xf32> to vector<1x128xf32>
    %25 = vector.broadcast %23 : vector<32x1xf32> to vector<32x128xf32>
    %26 = vector.broadcast %24 : vector<1x128xf32> to vector<32x128xf32>
    %27 = arith.mulf %25, %26 : vector<32x128xf32>
    %28 = arith.addf %22, %27 : vector<32x128xf32>
    %cst = arith.constant 0.000000e+00 : f32
    %29 = vector.broadcast %cst : f32 to vector<32x128xf32>
    %30 = arith.maximumf %28, %29 : vector<32x128xf32>
    %c0_5 = arith.constant 0 : index
    %c0_6 = arith.constant 0 : index
    %31 = vector.load %arg4[%c0_5, %c0_6] : memref<32x128xf32, #tpu.memory_space<vmem>>, vector<32x128xf32>
    tpu.vector_store %arg4[%c0_5, %c0_6], %30 {strides = array<i32>} : memref<32x128xf32, #tpu.memory_space<vmem>>, vector<32x128xf32>,
    %c0_i32 = arith.constant 0 : i32
    %32 = arith.cmpi ne, %arg0, %c0_i32 : i32
    %33 = arith.extui %32 : i1 to i32
    %c0_i32_7 = arith.constant 0 : i32
    %34 = arith.cmpi ne, %33, %c0_i32_7 : i32
    scf.if %34 {
      %cst_10 = arith.constant dense<0.000000e+00> : vector<32xf32>
      %38 = vector.multi_reduction <add>, %30, %cst_10 [1] : vector<32x128xf32> to vector<32xf32>
      %39 = vector.shape_cast %38 : vector<32xf32> to vector<32x1xf32>
      %40 = arith.mulf %30, %30 : vector<32x128xf32>
      %cst_11 = arith.constant dense<0.000000e+00> : vector<32xf32>
      %41 = vector.multi_reduction <add>, %40, %cst_11 [1] : vector<32x128xf32> to vector<32xf32>
      %42 = vector.shape_cast %41 : vector<32xf32> to vector<32x1xf32>
      %43 = tpu.concatenate %39, %42 in 1 : vector<32x1xf32>, vector<32x1xf32> -> vector<32x2xf32>
      %44 = vector.shape_cast %43 : vector<32x2xf32> to vector<1x32x2xf32>
      %c0_12 = arith.constant 0 : index
      %c0_13 = arith.constant 0 : index
      %c0_14 = arith.constant 0 : index
      %45 = vector.load %arg5[%c0_12, %c0_13, %c0_14] : memref<1x32x2xf32, #tpu.memory_space<vmem>>, vector<1x32x2xf32>
      tpu.vector_store %arg5[%c0_12, %c0_13, %c0_14], %44 {strides = array<i32>} : memref<1x32x2xf32, #tpu.memory_space<vmem>>, vector<1x32x2xf32>,
    } else {
    }
    %c0_i32_8 = arith.constant 0 : i32
    %35 = arith.cmpi eq, %arg0, %c0_i32_8 : i32
    %36 = arith.extui %35 : i1 to i32
    %c0_i32_9 = arith.constant 0 : i32
    %37 = arith.cmpi ne, %36, %c0_i32_9 : i32
    scf.if %37 {
      %38 = tpu.iota {dimensions = array<i32: 1>} : vector<1x128xi32>
      %c56_i32 = arith.constant 56 : i32
      %39 = vector.broadcast %c56_i32 : i32 to vector<1x128xi32>
      %40 = arith.cmpi slt, %38, %39 : vector<1x128xi32>
      %cst_10 = arith.constant 0.000000e+00 : f32
      %41 = vector.shape_cast %40 : vector<1x128xi1> to vector<1x128xi1>
      %42 = vector.broadcast %41 : vector<1x128xi1> to vector<32x128xi1>
      %43 = vector.broadcast %cst_10 : f32 to vector<32x128xf32>
      %44 = arith.select %42, %30, %43 : vector<32x128xi1>, vector<32x128xf32>
      %cst_11 = arith.constant dense<0.000000e+00> : vector<32xf32>
      %45 = vector.multi_reduction <add>, %44, %cst_11 [1] : vector<32x128xf32> to vector<32xf32>
      %46 = vector.shape_cast %45 : vector<32xf32> to vector<32x1xf32>
      %47 = arith.mulf %44, %30 : vector<32x128xf32>
      %cst_12 = arith.constant dense<0.000000e+00> : vector<32xf32>
      %48 = vector.multi_reduction <add>, %47, %cst_12 [1] : vector<32x128xf32> to vector<32xf32>
      %49 = vector.shape_cast %48 : vector<32xf32> to vector<32x1xf32>
      %50 = tpu.concatenate %46, %49 in 1 : vector<32x1xf32>, vector<32x1xf32> -> vector<32x2xf32>
      %51 = vector.shape_cast %50 : vector<32x2xf32> to vector<1x32x2xf32>
      %c0_13 = arith.constant 0 : index
      %c0_14 = arith.constant 0 : index
      %c0_15 = arith.constant 0 : index
      %52 = vector.load %arg5[%c0_13, %c0_14, %c0_15] : memref<1x32x2xf32, #tpu.memory_space<vmem>>, vector<1x32x2xf32>
      tpu.vector_store %arg5[%c0_13, %c0_14, %c0_15], %51 {strides = array<i32>} : memref<1x32x2xf32, #tpu.memory_space<vmem>>, vector<1x32x2xf32>,
    } else {
    }
    return
  }
  func.func @transform_0(%arg0: i32) -> (i32, i32) {
    %c0_i32 = arith.constant 0 : i32
    %c0_i32_0 = arith.constant 0 : i32
    %c0_i32_1 = arith.constant 0 : i32
    return %c0_i32, %c0_i32_0 : i32, i32
  }
  func.func @transform_1(%arg0: i32) -> (i32, i32) {
    %c0_i32 = arith.constant 0 : i32
    %c0_i32_0 = arith.constant 0 : i32
    %c0_i32_1 = arith.constant 0 : i32
    return %c0_i32, %c0_i32_0 : i32, i32
  }
  func.func @transform_2(%arg0: i32) -> (i32, i32) {
    %c0_i32 = arith.constant 0 : i32
    %c0_i32_0 = arith.constant 0 : i32
    return %c0_i32, %arg0 : i32, i32
  }
  func.func @transform_3(%arg0: i32) -> (i32, i32) {
    %c0_i32 = arith.constant 0 : i32
    %c0_i32_0 = arith.constant 0 : i32
    return %c0_i32, %arg0 : i32, i32
  }
  func.func @transform_4(%arg0: i32) -> (i32, i32, i32) {
    %c0_i32 = arith.constant 0 : i32
    %c0_i32_0 = arith.constant 0 : i32
    %c0_i32_1 = arith.constant 0 : i32
    return %arg0, %c0_i32, %c0_i32_0 : i32, i32, i32
  }
}

module attributes {stable_mosaic.version = 11 : i64} {
  func.func @_stage_kernel(%arg0: i32, %arg1: memref<1x32x2xf32, #tpu.memory_space<vmem>>, %arg2: memref<32x1xf32, #tpu.memory_space<vmem>>, %arg3: memref<32x1xf32, #tpu.memory_space<vmem>>, %arg4: memref<32x32xf32, #tpu.memory_space<vmem>>, %arg5: memref<32x1xf32, #tpu.memory_space<vmem>>, %arg6: memref<32x128xf32, #tpu.memory_space<vmem>>, %arg7: memref<32x128xf32, #tpu.memory_space<vmem>>, %arg8: memref<32x128xf32, #tpu.memory_space<vmem>>, %arg9: memref<1x32x2xf32, #tpu.memory_space<vmem>>) attributes {dimension_semantics = [#tpu.dimension_semantics<parallel>], iteration_bounds = array<i64: 1>, scalar_prefetch = 0 : i64, scratch_operands = 0 : i64, tpu.core_type = #tpu.core_type<tc>, window_params = [{pipeline_mode = #tpu.pipeline_mode<synchronous>, transform_indices = @transform_0, window_bounds = array<i64: 1, 32, 2>}, {pipeline_mode = #tpu.pipeline_mode<synchronous>, transform_indices = @transform_1, window_bounds = array<i64: 32, 1>}, {pipeline_mode = #tpu.pipeline_mode<synchronous>, transform_indices = @transform_2, window_bounds = array<i64: 32, 1>}, {pipeline_mode = #tpu.pipeline_mode<synchronous>, transform_indices = @transform_3, window_bounds = array<i64: 32, 32>}, {pipeline_mode = #tpu.pipeline_mode<synchronous>, transform_indices = @transform_4, window_bounds = array<i64: 32, 1>}, {transform_indices = @transform_5, window_bounds = array<i64: 32, 128>}, {transform_indices = @transform_6, window_bounds = array<i64: 32, 128>}, {transform_indices = @transform_7, window_bounds = array<i64: 32, 128>}, {transform_indices = @transform_8, window_bounds = array<i64: 1, 32, 2>}]} {
    %c0 = arith.constant 0 : index
    %c0_0 = arith.constant 0 : index
    %0 = vector.load %arg6[%c0, %c0_0] : memref<32x128xf32, #tpu.memory_space<vmem>>, vector<32x128xf32>
    %c0_1 = arith.constant 0 : index
    %c0_2 = arith.constant 0 : index
    %c0_3 = arith.constant 0 : index
    %1 = vector.load %arg1[%c0_1, %c0_2, %c0_3] : memref<1x32x2xf32, #tpu.memory_space<vmem>>, vector<1x32x2xf32>
    %cst = arith.constant dense<0.000000e+00> : vector<32x2xf32>
    %2 = vector.multi_reduction <add>, %1, %cst [0] : vector<1x32x2xf32> to vector<32x2xf32>
    %3 = vector.extract_strided_slice %2 {offsets = [0, 0], sizes = [32, 1], strides = [1, 1]} : vector<32x2xf32> to vector<32x1xf32>
    %cst_4 = arith.constant 0.0178571437 : f32
    %4 = vector.broadcast %cst_4 : f32 to vector<32x1xf32>
    %5 = arith.mulf %3, %4 : vector<32x1xf32>
    %6 = vector.extract_strided_slice %2 {offsets = [0, 1], sizes = [32, 1], strides = [1, 1]} : vector<32x2xf32> to vector<32x1xf32>
    %cst_5 = arith.constant 0.0178571437 : f32
    %7 = vector.broadcast %cst_5 : f32 to vector<32x1xf32>
    %8 = arith.mulf %6, %7 : vector<32x1xf32>
    %9 = arith.mulf %5, %5 : vector<32x1xf32>
    %10 = arith.subf %8, %9 : vector<32x1xf32>
    %cst_6 = arith.constant 0.000000e+00 : f32
    %11 = vector.broadcast %cst_6 : f32 to vector<32x1xf32>
    %12 = arith.maximumf %10, %11 : vector<32x1xf32>
    %c0_7 = arith.constant 0 : index
    %c0_8 = arith.constant 0 : index
    %13 = vector.load %arg2[%c0_7, %c0_8] : memref<32x1xf32, #tpu.memory_space<vmem>>, vector<32x1xf32>
    %cst_9 = arith.constant 9.99999974E-6 : f32
    %14 = vector.broadcast %cst_9 : f32 to vector<32x1xf32>
    %15 = arith.addf %12, %14 : vector<32x1xf32>
    %16 = math.rsqrt %15 : vector<32x1xf32>
    %17 = arith.mulf %13, %16 : vector<32x1xf32>
    %c0_10 = arith.constant 0 : index
    %c0_11 = arith.constant 0 : index
    %18 = vector.load %arg3[%c0_10, %c0_11] : memref<32x1xf32, #tpu.memory_space<vmem>>, vector<32x1xf32>
    %19 = arith.mulf %5, %17 : vector<32x1xf32>
    %20 = arith.subf %18, %19 : vector<32x1xf32>
    %21 = vector.broadcast %17 : vector<32x1xf32> to vector<32x128xf32>
    %22 = arith.mulf %0, %21 : vector<32x128xf32>
    %23 = vector.broadcast %20 : vector<32x1xf32> to vector<32x128xf32>
    %24 = arith.addf %22, %23 : vector<32x128xf32>
    %cst_12 = arith.constant 0.000000e+00 : f32
    %25 = vector.broadcast %cst_12 : f32 to vector<32x128xf32>
    %26 = arith.maximumf %24, %25 : vector<32x128xf32>
    %c0_13 = arith.constant 0 : index
    %c0_14 = arith.constant 0 : index
    %27 = vector.load %arg4[%c0_13, %c0_14] : memref<32x32xf32, #tpu.memory_space<vmem>>, vector<32x32xf32>
    %cst_15 = arith.constant dense<0.000000e+00> : vector<32x128xf32>
    %28 = tpu.matmul %27, %26, %cst_15 {dimension_numbers = #tpu.dot_dimension_numbers<[1], [0], [0], [1], [0, 0, 1, 1], [], []>} : vector<32x32xf32>, vector<32x128xf32>, vector<32x128xf32> -> vector<32x128xf32>
    %c0_16 = arith.constant 0 : index
    %c0_17 = arith.constant 0 : index
    %29 = vector.load %arg5[%c0_16, %c0_17] : memref<32x1xf32, #tpu.memory_space<vmem>>, vector<32x1xf32>
    %30 = vector.broadcast %29 : vector<32x1xf32> to vector<32x128xf32>
    %31 = arith.addf %28, %30 : vector<32x128xf32>
    %c0_18 = arith.constant 0 : index
    %c0_19 = arith.constant 0 : index
    %32 = vector.load %arg7[%c0_18, %c0_19] : memref<32x128xf32, #tpu.memory_space<vmem>>, vector<32x128xf32>
    %33 = arith.addf %31, %32 : vector<32x128xf32>
    %c0_20 = arith.constant 0 : index
    %c0_21 = arith.constant 0 : index
    %34 = vector.load %arg8[%c0_20, %c0_21] : memref<32x128xf32, #tpu.memory_space<vmem>>, vector<32x128xf32>
    tpu.vector_store %arg8[%c0_20, %c0_21], %33 {strides = array<i32>} : memref<32x128xf32, #tpu.memory_space<vmem>>, vector<32x128xf32>,
    %c0_i32 = arith.constant 0 : i32
    %35 = arith.cmpi ne, %arg0, %c0_i32 : i32
    %36 = arith.extui %35 : i1 to i32
    %c0_i32_22 = arith.constant 0 : i32
    %37 = arith.cmpi ne, %36, %c0_i32_22 : i32
    scf.if %37 {
      %cst_25 = arith.constant dense<0.000000e+00> : vector<32xf32>
      %41 = vector.multi_reduction <add>, %33, %cst_25 [1] : vector<32x128xf32> to vector<32xf32>
      %42 = vector.shape_cast %41 : vector<32xf32> to vector<32x1xf32>
      %43 = arith.mulf %33, %33 : vector<32x128xf32>
      %cst_26 = arith.constant dense<0.000000e+00> : vector<32xf32>
      %44 = vector.multi_reduction <add>, %43, %cst_26 [1] : vector<32x128xf32> to vector<32xf32>
      %45 = vector.shape_cast %44 : vector<32xf32> to vector<32x1xf32>
      %46 = tpu.concatenate %42, %45 in 1 : vector<32x1xf32>, vector<32x1xf32> -> vector<32x2xf32>
      %47 = vector.shape_cast %46 : vector<32x2xf32> to vector<1x32x2xf32>
      %c0_27 = arith.constant 0 : index
      %c0_28 = arith.constant 0 : index
      %c0_29 = arith.constant 0 : index
      %48 = vector.load %arg9[%c0_27, %c0_28, %c0_29] : memref<1x32x2xf32, #tpu.memory_space<vmem>>, vector<1x32x2xf32>
      tpu.vector_store %arg9[%c0_27, %c0_28, %c0_29], %47 {strides = array<i32>} : memref<1x32x2xf32, #tpu.memory_space<vmem>>, vector<1x32x2xf32>,
    } else {
    }
    %c0_i32_23 = arith.constant 0 : i32
    %38 = arith.cmpi eq, %arg0, %c0_i32_23 : i32
    %39 = arith.extui %38 : i1 to i32
    %c0_i32_24 = arith.constant 0 : i32
    %40 = arith.cmpi ne, %39, %c0_i32_24 : i32
    scf.if %40 {
      %41 = tpu.iota {dimensions = array<i32: 1>} : vector<1x128xi32>
      %c56_i32 = arith.constant 56 : i32
      %42 = vector.broadcast %c56_i32 : i32 to vector<1x128xi32>
      %43 = arith.cmpi slt, %41, %42 : vector<1x128xi32>
      %cst_25 = arith.constant 0.000000e+00 : f32
      %44 = vector.shape_cast %43 : vector<1x128xi1> to vector<1x128xi1>
      %45 = vector.broadcast %44 : vector<1x128xi1> to vector<32x128xi1>
      %46 = vector.broadcast %cst_25 : f32 to vector<32x128xf32>
      %47 = arith.select %45, %33, %46 : vector<32x128xi1>, vector<32x128xf32>
      %cst_26 = arith.constant dense<0.000000e+00> : vector<32xf32>
      %48 = vector.multi_reduction <add>, %47, %cst_26 [1] : vector<32x128xf32> to vector<32xf32>
      %49 = vector.shape_cast %48 : vector<32xf32> to vector<32x1xf32>
      %50 = arith.mulf %47, %33 : vector<32x128xf32>
      %cst_27 = arith.constant dense<0.000000e+00> : vector<32xf32>
      %51 = vector.multi_reduction <add>, %50, %cst_27 [1] : vector<32x128xf32> to vector<32xf32>
      %52 = vector.shape_cast %51 : vector<32xf32> to vector<32x1xf32>
      %53 = tpu.concatenate %49, %52 in 1 : vector<32x1xf32>, vector<32x1xf32> -> vector<32x2xf32>
      %54 = vector.shape_cast %53 : vector<32x2xf32> to vector<1x32x2xf32>
      %c0_28 = arith.constant 0 : index
      %c0_29 = arith.constant 0 : index
      %c0_30 = arith.constant 0 : index
      %55 = vector.load %arg9[%c0_28, %c0_29, %c0_30] : memref<1x32x2xf32, #tpu.memory_space<vmem>>, vector<1x32x2xf32>
      tpu.vector_store %arg9[%c0_28, %c0_29, %c0_30], %54 {strides = array<i32>} : memref<1x32x2xf32, #tpu.memory_space<vmem>>, vector<1x32x2xf32>,
    } else {
    }
    return
  }
  func.func @transform_0(%arg0: i32) -> (i32, i32, i32) {
    %c0_i32 = arith.constant 0 : i32
    %c0_i32_0 = arith.constant 0 : i32
    %c0_i32_1 = arith.constant 0 : i32
    %c0_i32_2 = arith.constant 0 : i32
    return %c0_i32, %c0_i32_0, %c0_i32_1 : i32, i32, i32
  }
  func.func @transform_1(%arg0: i32) -> (i32, i32) {
    %c0_i32 = arith.constant 0 : i32
    %c0_i32_0 = arith.constant 0 : i32
    %c0_i32_1 = arith.constant 0 : i32
    return %c0_i32, %c0_i32_0 : i32, i32
  }
  func.func @transform_2(%arg0: i32) -> (i32, i32) {
    %c0_i32 = arith.constant 0 : i32
    %c0_i32_0 = arith.constant 0 : i32
    %c0_i32_1 = arith.constant 0 : i32
    return %c0_i32, %c0_i32_0 : i32, i32
  }
  func.func @transform_3(%arg0: i32) -> (i32, i32) {
    %c0_i32 = arith.constant 0 : i32
    %c0_i32_0 = arith.constant 0 : i32
    %c0_i32_1 = arith.constant 0 : i32
    return %c0_i32, %c0_i32_0 : i32, i32
  }
  func.func @transform_4(%arg0: i32) -> (i32, i32) {
    %c0_i32 = arith.constant 0 : i32
    %c0_i32_0 = arith.constant 0 : i32
    %c0_i32_1 = arith.constant 0 : i32
    return %c0_i32, %c0_i32_0 : i32, i32
  }
  func.func @transform_5(%arg0: i32) -> (i32, i32) {
    %c0_i32 = arith.constant 0 : i32
    %c0_i32_0 = arith.constant 0 : i32
    return %c0_i32, %arg0 : i32, i32
  }
  func.func @transform_6(%arg0: i32) -> (i32, i32) {
    %c0_i32 = arith.constant 0 : i32
    %c0_i32_0 = arith.constant 0 : i32
    return %c0_i32, %arg0 : i32, i32
  }
  func.func @transform_7(%arg0: i32) -> (i32, i32) {
    %c0_i32 = arith.constant 0 : i32
    %c0_i32_0 = arith.constant 0 : i32
    return %c0_i32, %arg0 : i32, i32
  }
  func.func @transform_8(%arg0: i32) -> (i32, i32, i32) {
    %c0_i32 = arith.constant 0 : i32
    %c0_i32_0 = arith.constant 0 : i32
    %c0_i32_1 = arith.constant 0 : i32
    return %arg0, %c0_i32, %c0_i32_0 : i32, i32, i32
  }
}

module attributes {stable_mosaic.version = 11 : i64} {
  func.func @_stage_kernel(%arg0: i32, %arg1: memref<1x32x2xf32, #tpu.memory_space<vmem>>, %arg2: memref<32x1xf32, #tpu.memory_space<vmem>>, %arg3: memref<32x1xf32, #tpu.memory_space<vmem>>, %arg4: memref<16x32xf32, #tpu.memory_space<vmem>>, %arg5: memref<16x1xf32, #tpu.memory_space<vmem>>, %arg6: memref<32x128xf32, #tpu.memory_space<vmem>>, %arg7: memref<16x128xf32, #tpu.memory_space<vmem>>) attributes {dimension_semantics = [#tpu.dimension_semantics<parallel>], iteration_bounds = array<i64: 1>, scalar_prefetch = 0 : i64, scratch_operands = 0 : i64, tpu.core_type = #tpu.core_type<tc>, window_params = [{pipeline_mode = #tpu.pipeline_mode<synchronous>, transform_indices = @transform_0, window_bounds = array<i64: 1, 32, 2>}, {pipeline_mode = #tpu.pipeline_mode<synchronous>, transform_indices = @transform_1, window_bounds = array<i64: 32, 1>}, {pipeline_mode = #tpu.pipeline_mode<synchronous>, transform_indices = @transform_2, window_bounds = array<i64: 32, 1>}, {pipeline_mode = #tpu.pipeline_mode<synchronous>, transform_indices = @transform_3, window_bounds = array<i64: 16, 32>}, {pipeline_mode = #tpu.pipeline_mode<synchronous>, transform_indices = @transform_4, window_bounds = array<i64: 16, 1>}, {transform_indices = @transform_5, window_bounds = array<i64: 32, 128>}, {transform_indices = @transform_6, window_bounds = array<i64: 16, 128>}]} {
    %c0 = arith.constant 0 : index
    %c0_0 = arith.constant 0 : index
    %0 = vector.load %arg6[%c0, %c0_0] : memref<32x128xf32, #tpu.memory_space<vmem>>, vector<32x128xf32>
    %c0_1 = arith.constant 0 : index
    %c0_2 = arith.constant 0 : index
    %c0_3 = arith.constant 0 : index
    %1 = vector.load %arg1[%c0_1, %c0_2, %c0_3] : memref<1x32x2xf32, #tpu.memory_space<vmem>>, vector<1x32x2xf32>
    %cst = arith.constant dense<0.000000e+00> : vector<32x2xf32>
    %2 = vector.multi_reduction <add>, %1, %cst [0] : vector<1x32x2xf32> to vector<32x2xf32>
    %3 = vector.extract_strided_slice %2 {offsets = [0, 0], sizes = [32, 1], strides = [1, 1]} : vector<32x2xf32> to vector<32x1xf32>
    %cst_4 = arith.constant 0.0178571437 : f32
    %4 = vector.broadcast %cst_4 : f32 to vector<32x1xf32>
    %5 = arith.mulf %3, %4 : vector<32x1xf32>
    %6 = vector.extract_strided_slice %2 {offsets = [0, 1], sizes = [32, 1], strides = [1, 1]} : vector<32x2xf32> to vector<32x1xf32>
    %cst_5 = arith.constant 0.0178571437 : f32
    %7 = vector.broadcast %cst_5 : f32 to vector<32x1xf32>
    %8 = arith.mulf %6, %7 : vector<32x1xf32>
    %9 = arith.mulf %5, %5 : vector<32x1xf32>
    %10 = arith.subf %8, %9 : vector<32x1xf32>
    %cst_6 = arith.constant 0.000000e+00 : f32
    %11 = vector.broadcast %cst_6 : f32 to vector<32x1xf32>
    %12 = arith.maximumf %10, %11 : vector<32x1xf32>
    %c0_7 = arith.constant 0 : index
    %c0_8 = arith.constant 0 : index
    %13 = vector.load %arg2[%c0_7, %c0_8] : memref<32x1xf32, #tpu.memory_space<vmem>>, vector<32x1xf32>
    %cst_9 = arith.constant 9.99999974E-6 : f32
    %14 = vector.broadcast %cst_9 : f32 to vector<32x1xf32>
    %15 = arith.addf %12, %14 : vector<32x1xf32>
    %16 = math.rsqrt %15 : vector<32x1xf32>
    %17 = arith.mulf %13, %16 : vector<32x1xf32>
    %c0_10 = arith.constant 0 : index
    %c0_11 = arith.constant 0 : index
    %18 = vector.load %arg3[%c0_10, %c0_11] : memref<32x1xf32, #tpu.memory_space<vmem>>, vector<32x1xf32>
    %19 = arith.mulf %5, %17 : vector<32x1xf32>
    %20 = arith.subf %18, %19 : vector<32x1xf32>
    %21 = vector.broadcast %17 : vector<32x1xf32> to vector<32x128xf32>
    %22 = arith.mulf %0, %21 : vector<32x128xf32>
    %23 = vector.broadcast %20 : vector<32x1xf32> to vector<32x128xf32>
    %24 = arith.addf %22, %23 : vector<32x128xf32>
    %cst_12 = arith.constant 0.000000e+00 : f32
    %25 = vector.broadcast %cst_12 : f32 to vector<32x128xf32>
    %26 = arith.maximumf %24, %25 : vector<32x128xf32>
    %c0_13 = arith.constant 0 : index
    %c0_14 = arith.constant 0 : index
    %27 = vector.load %arg4[%c0_13, %c0_14] : memref<16x32xf32, #tpu.memory_space<vmem>>, vector<16x32xf32>
    %cst_15 = arith.constant dense<0.000000e+00> : vector<16x128xf32>
    %28 = tpu.matmul %27, %26, %cst_15 {dimension_numbers = #tpu.dot_dimension_numbers<[1], [0], [0], [1], [0, 0, 1, 1], [], []>} : vector<16x32xf32>, vector<32x128xf32>, vector<16x128xf32> -> vector<16x128xf32>
    %c0_16 = arith.constant 0 : index
    %c0_17 = arith.constant 0 : index
    %29 = vector.load %arg5[%c0_16, %c0_17] : memref<16x1xf32, #tpu.memory_space<vmem>>, vector<16x1xf32>
    %30 = vector.broadcast %29 : vector<16x1xf32> to vector<16x128xf32>
    %31 = arith.addf %28, %30 : vector<16x128xf32>
    %c0_18 = arith.constant 0 : index
    %c0_19 = arith.constant 0 : index
    %32 = vector.load %arg7[%c0_18, %c0_19] : memref<16x128xf32, #tpu.memory_space<vmem>>, vector<16x128xf32>
    tpu.vector_store %arg7[%c0_18, %c0_19], %31 {strides = array<i32>} : memref<16x128xf32, #tpu.memory_space<vmem>>, vector<16x128xf32>,
    return
  }
  func.func @transform_0(%arg0: i32) -> (i32, i32, i32) {
    %c0_i32 = arith.constant 0 : i32
    %c0_i32_0 = arith.constant 0 : i32
    %c0_i32_1 = arith.constant 0 : i32
    %c0_i32_2 = arith.constant 0 : i32
    return %c0_i32, %c0_i32_0, %c0_i32_1 : i32, i32, i32
  }
  func.func @transform_1(%arg0: i32) -> (i32, i32) {
    %c0_i32 = arith.constant 0 : i32
    %c0_i32_0 = arith.constant 0 : i32
    %c0_i32_1 = arith.constant 0 : i32
    return %c0_i32, %c0_i32_0 : i32, i32
  }
  func.func @transform_2(%arg0: i32) -> (i32, i32) {
    %c0_i32 = arith.constant 0 : i32
    %c0_i32_0 = arith.constant 0 : i32
    %c0_i32_1 = arith.constant 0 : i32
    return %c0_i32, %c0_i32_0 : i32, i32
  }
  func.func @transform_3(%arg0: i32) -> (i32, i32) {
    %c0_i32 = arith.constant 0 : i32
    %c0_i32_0 = arith.constant 0 : i32
    %c0_i32_1 = arith.constant 0 : i32
    return %c0_i32, %c0_i32_0 : i32, i32
  }
  func.func @transform_4(%arg0: i32) -> (i32, i32) {
    %c0_i32 = arith.constant 0 : i32
    %c0_i32_0 = arith.constant 0 : i32
    %c0_i32_1 = arith.constant 0 : i32
    return %c0_i32, %c0_i32_0 : i32, i32
  }
  func.func @transform_5(%arg0: i32) -> (i32, i32) {
    %c0_i32 = arith.constant 0 : i32
    %c0_i32_0 = arith.constant 0 : i32
    return %c0_i32, %arg0 : i32, i32
  }
  func.func @transform_6(%arg0: i32) -> (i32, i32) {
    %c0_i32 = arith.constant 0 : i32
    %c0_i32_0 = arith.constant 0 : i32
    return %c0_i32, %arg0 : i32, i32
  }
}

</mosaic_0001>

<bundles_post_ra>
// kernel: net_forward.6
= control target key start
LH: loop header
LB: loop body
LE: loop exit
PB: predicated region body
PF: predicated region fallthrough
CT: control target
= control target key end

     0   :  { %v266_v0 = vmov 0   ;;  %v267_v9 = vmov 1   ;;  %v268_v10 = vmov 2   ;;  %v269_v11 = vmov 3   ;;  %s350_s0 = inlined_call_operand.vmem [shape: f32[32,4], index: 0, kind: input, shape index: {}]   ;;  %s351_s1 = inlined_call_operand.vmem [shape: f32[32,1], index: 1, kind: input, shape index: {}]   ;;  %s352_s2 = inlined_call_operand.vmem [shape: f32[4,128], index: 2, kind: input, shape index: {}]   ;;  %s353_s3 = inlined_call_operand.vmem [shape: f32[32,128], index: 3, kind: output, shape index: {0}]   ;;  %s354_s4 = inlined_call_operand.vmem [shape: f32[1,32,2], index: 4, kind: output, shape index: {1}]  }
   0x1   :  { %259 = vset.pattern.permute.xlu1 %v266_v0  ;;  %258 = vset.pattern.permute.xlu0 %v266_v0  ;;  %v19_v1 = vld [vmem:[%s350_s0 + $0x10] sm:$0xff]  ;;  %v17_v2 = vld [vmem:[%s350_s0] sm:$0xff]  ;;  %v20_v3 = vld [vmem:[%s350_s0 + $0x18] sm:$0xff]  ;;  %v65_v18 = vlaneseq  ;;  %vm236_vm1 = vcmask 7168   ;;  %vm241_vm2 = vcmask 15360  }
   0x2   :  { %57 = vperm.xlu1 %259, %v19_v1   ;;  %47 = vperm.xlu0 %258, %v17_v2   ;;  %v18_v4 = vld [vmem:[%s350_s0 + $0x8] sm:$0xff]  ;;  %v21_v6 = vld [vmem:[%s351_s1] sm:$0xff]  ;;  %v24_v7 = vld [vmem:[%s351_s1 + $0x18] sm:$0xff] }
   0x3   :  { %v22_v5 = vld [vmem:[%s351_s1 + $0x8] sm:$0xff]  ;;  %v23_v8 = vld [vmem:[%s351_s1 + $0x10] sm:$0xff]  ;;  %v66_v21 = vshrl.u32 %v65_v18, 7  ;;  %v16_v26 = vld [vmem:[%s352_s2] sm:$0xf]  ;;  %v208_v46 = vand.u32 127, %v65_v18 }
   0x5   :  { %v67_v24 = vsub.s32 0, %v66_v21  ;;  %v95_v25 = vsub.s32 1, %v66_v21  ;;  %v123_v27 = vsub.s32 2, %v66_v21  ;;  %v151_v34 = vsub.s32 3, %v66_v21 }
   0x6   :  { %62 = vperm.xlu1 %259, %v20_v3   ;;  %52 = vperm.xlu0 %258, %v18_v4   ;;  %vm209_vm0 = vcmp.lt.s32.totalorder %v208_v46, 56 }
   0x7   :  { %v68_v30 = vrot.slane %v16_v26, %v67_v24  ;;  %v96_v31 = vrot.slane %v16_v26, %v95_v25  ;;  %v124_v33 = vrot.slane %v16_v26, %v123_v27  ;;  %v152_v40 = vrot.slane %v16_v26, %v151_v34 }
   0xa   :  { %32 = vperm.xlu1 %259, %v22_v5   ;;  %27 = vperm.xlu0 %258, %v21_v6  }
   0xe   :  { %42 = vperm.xlu1 %259, %v24_v7   ;;  %37 = vperm.xlu0 %258, %v23_v8  }
  0x12   :  { %261 = vset.pattern.permute.xlu1 %v267_v9  ;;  %260 = vset.pattern.permute.xlu0 %v267_v9 }
  0x13   :  { %82 = vperm.xlu1 %261, %v18_v4   ;;  %78 = vperm.xlu0 %260, %v17_v2  }
  0x17   :  { %86 = vperm.xlu1 %261, %v19_v1   ;;  %90 = vperm.xlu0 %260, %v20_v3  }
  0x1b   :  { %262 = vset.pattern.permute.xlu1 %v268_v10  ;;  %263 = vset.pattern.permute.xlu0 %v268_v10 }
  0x1c   :  { %106 = vperm.xlu1 %262, %v17_v2   ;;  %110 = vperm.xlu0 %263, %v18_v4  }
  0x20   :  { %114 = vperm.xlu1 %262, %v19_v1   ;;  %264 = vset.pattern.permute.xlu0 %v269_v11 }
  0x21   :  { %134 = vperm.xlu0 %264, %v17_v2  }
  0x24   :  { %118 = vperm.xlu1 %262, %v20_v3  }
  0x25   :  { %146 = vperm.xlu0 %264, %v20_v3  }
  0x28   :  { %265 = vset.pattern.permute.xlu1 %v269_v11 }
  0x29   :  { %138 = vperm.xlu1 %265, %v18_v4  }
  0x2d   :  { %142 = vperm.xlu1 %265, %v19_v1  }
  0x7d   :  { %v58_v12 = vpop.permute.xlu1 %57  ;;  %v48_v13 = vpop.permute.xlu0 %47 }
  0x7e   :  { %v69_v32 = vmul.f32 %v68_v30, %v48_v13  ;;  %v71_v62 = vmul.f32 %v68_v30, %v58_v12 }
  0x81   :  { %v63_v14 = vpop.permute.xlu1 %62  ;;  %v53_v15 = vpop.permute.xlu0 %52 }
  0x82   :  { %v72_v43 = vmul.f32 %v68_v30, %v63_v14  ;;  %v70_v47 = vmul.f32 %v68_v30, %v53_v15 }
  0x85   :  { %v33_v16 = vpop.permute.xlu1 %32  ;;  %v28_v17 = vpop.permute.xlu0 %27 }
  0x86   :  { %v73_v38 = vadd.f32 %v69_v32, %v28_v17  ;;  %v74_v57 = vadd.f32 %v70_v47, %v33_v16 }
  0x89   :  { %v43_v19 = vpop.permute.xlu1 %42  ;;  %v38_v20 = vpop.permute.xlu0 %37 }
  0x8a   :  { %v76_v50 = vadd.f32 %v72_v43, %v43_v19  ;;  %v75_v4 = vadd.f32 %v71_v62, %v38_v20 }
  0x8e   :  { %v83_v22 = vpop.permute.xlu1 %82  ;;  %v79_v23 = vpop.permute.xlu0 %78 }
  0x8f   :  { %v97_v35 = vmul.f32 %v96_v31, %v79_v23  ;;  %v98_v51 = vmul.f32 %v96_v31, %v83_v22 }
  0x91   :  { %v101_v41 = vadd.f32 %v97_v35, %v73_v38  ;;  %v102_v63 = vadd.f32 %v98_v51, %v74_v57 }
  0x92   :  { %v87_v28 = vpop.permute.xlu1 %86  ;;  %v91_v29 = vpop.permute.xlu0 %90 }
  0x93   :  { %v100_v44 = vmul.f32 %v96_v31, %v91_v29  ;;  %v99_v0 = vmul.f32 %v96_v31, %v87_v28 }
  0x95   :  { %v104_v54 = vadd.f32 %v100_v44, %v76_v50  ;;  %v103_v9 = vadd.f32 %v99_v0, %v75_v4 }
  0x97   :  { %v107_v36 = vpop.permute.xlu1 %106  ;;  %v111_v37 = vpop.permute.xlu0 %110 }
  0x98   :  { %v125_v39 = vmul.f32 %v124_v33, %v107_v36  ;;  %v126_v58 = vmul.f32 %v124_v33, %v111_v37 }
  0x9a   :  { %v129_v48 = vadd.f32 %v125_v39, %v101_v41  ;;  %v130_v5 = vadd.f32 %v126_v58, %v102_v63 }
  0x9b   :  { %v115_v42 = vpop.permute.xlu1 %114 }
  0x9c   :  { %v135_v45 = vpop.permute.xlu0 %134  ;;  %v127_v6 = vmul.f32 %v124_v33, %v115_v42 }
  0x9d   :  { %v153_v49 = vmul.f32 %v152_v40, %v135_v45 }
  0x9e   :  { %v131_v13 = vadd.f32 %v127_v6, %v103_v9 }
  0x9f   :  { %v157_v52 = vadd.f32 %v153_v49, %v129_v48  ;;  %v119_v53 = vpop.permute.xlu1 %118 }
  0xa0   :  { %v128_v55 = vmul.f32 %v124_v33, %v119_v53  ;;  %v147_v56 = vpop.permute.xlu0 %146 }
  0xa1   :  { %v161_v59 = vmax.f32 %v157_v52, 0.0  ;;  %v156_v60 = vmul.f32 %v152_v40, %v147_v56 }
  0xa2   :  { %v132_v61 = vadd.f32 %v128_v55, %v104_v54 }
  0xa3   :  { %165 = vst [vmem:[%s353_s3] sm:$0xff] %v161_v59  ;;  %v212_v1 = vsel %vm209_vm0, %v161_v59, 0.0 }
  0xa4   :  { %v160_v2 = vadd.f32 %v156_v60, %v132_v61  ;;  %v139_v3 = vpop.permute.xlu1 %138  ;;  %216 = vadd.xlane.f32.xlu1 %v212_v1  ;;  %v224_v22 = vmul.f32 %v212_v1, %v161_v59 }
  0xa5   :  { %v154_v7 = vmul.f32 %v152_v40, %v139_v3 }
  0xa6   :  { %v164_v8 = vmax.f32 %v160_v2, 0.0 }
  0xa7   :  { %v158_v10 = vadd.f32 %v154_v7, %v130_v5 }
  0xa8   :  { %168 = vst [vmem:[%s353_s3 + $0x18] sm:$0xff] %v164_v8  ;;  %v143_v11 = vpop.permute.xlu1 %142  ;;  %v215_v12 = vsel %vm209_vm0, %v164_v8, 0.0 }
  0xa9   :  { %v162_v14 = vmax.f32 %v158_v10, 0.0  ;;  %v155_v15 = vmul.f32 %v152_v40, %v143_v11  ;;  %222 = vadd.xlane.f32.xlu1 %v215_v12  ;;  %v227_v21 = vmul.f32 %v215_v12, %v164_v8 }
  0xab   :  { %166 = vst [vmem:[%s353_s3 + $0x8] sm:$0xff] %v162_v14  ;;  %v159_v16 = vadd.f32 %v155_v15, %v131_v13  ;;  %v213_v17 = vsel %vm209_vm0, %v162_v14, 0.0 }
  0xac   :  { %218 = vadd.xlane.f32.xlu0 %v213_v17  ;;  %v225_v18 = vmul.f32 %v213_v17, %v162_v14 }
  0xad   :  { %v163_v19 = vmax.f32 %v159_v16, 0.0 }
  0xae   :  { %230 = vadd.xlane.f32.xlu1 %v225_v18 }
  0xaf   :  { %167 = vst [vmem:[%s353_s3 + $0x10] sm:$0xff] %v163_v19  ;;  %v214_v20 = vsel %vm209_vm0, %v163_v19, 0.0 }
  0xb0   :  { %220 = vadd.xlane.f32.xlu0 %v214_v20  ;;  %v226_v23 = vmul.f32 %v214_v20, %v163_v19 }
  0xb2   :  { %234 = vadd.xlane.f32.xlu1 %v227_v21 }
  0xb4   :  { %228 = vadd.xlane.f32.xlu0 %v224_v22 }
  0xb8   :  { %232 = vadd.xlane.f32.xlu0 %v226_v23 }
 0x12d   :  { %v217_v24 = vpop.xlane.xlu1 %216 }
 0x132   :  { %v223_v25 = vpop.xlane.xlu1 %222 }
 0x135   :  { %v219_v26 = vpop.xlane.xlu0 %218 }
 0x137   :  { %v231_v27 = vpop.xlane.xlu1 %230 }
 0x138   :  { %v238_v28 = vsel %vm236_vm1, %v219_v26, %v231_v27 }
 0x139   :  { %243 = vst.msk [vmem:[%s354_s4 + $0x8] sm:$0xff] %vm241_vm2, %v238_v28  ;;  %v221_v29 = vpop.xlane.xlu0 %220 }
 0x13b   :  { %v235_v30 = vpop.xlane.xlu1 %234 }
 0x13c   :  { %v240_v31 = vsel %vm236_vm1, %v223_v25, %v235_v30 }
 0x13d   :  { %245 = vst.msk [vmem:[%s354_s4 + $0x18] sm:$0xff] %vm241_vm2, %v240_v31  ;;  %v229_v32 = vpop.xlane.xlu0 %228 }
 0x13e   :  { %v237_v33 = vsel %vm236_vm1, %v217_v24, %v229_v32 }
 0x13f   :  { %242 = vst.msk [vmem:[%s354_s4] sm:$0xff] %vm241_vm2, %v237_v33 }
 0x141   :  { %v233_v34 = vpop.xlane.xlu0 %232 }
 0x142   :  { %v239_v35 = vsel %vm236_vm1, %v221_v29, %v233_v34 }
 0x143   :  { %244 = vst.msk [vmem:[%s354_s4 + $0x10] sm:$0xff] %vm241_vm2, %v239_v35 }

// kernel: net_forward.7
= control target key start
LH: loop header
LB: loop body
LE: loop exit
PB: predicated region body
PF: predicated region fallthrough
CT: control target
= control target key end

     0   :  { %s427_s9 = smov 1   ;;  %v428_v28 = vmov 0   ;;  %vm193_vm0 = vcmask 261120   ;;  %vm362_vm2 = vcmask 7168   ;;  %vm367_vm3 = vcmask 15360   ;;  %s592_s0 = inlined_call_operand.vmem [shape: f32[1,32,2], index: 0, kind: input, shape index: {}]   ;;  %s593_s1 = inlined_call_operand.vmem [shape: f32[32,1], index: 1, kind: input, shape index: {}]   ;;  %s594_s2 = inlined_call_operand.vmem [shape: f32[32,1], index: 2, kind: input, shape index: {}]   ;;  %s595_s4 = inlined_call_operand.vmem [shape: f32[32,1], index: 4, kind: input, shape index: {}]   ;;  %s596_s3 = inlined_call_operand.vmem [shape: f32[32,32], index: 3, kind: input, shape index: {}]   ;;  %s597_s5 = inlined_call_operand.vmem [shape: f32[32,128], index: 5, kind: input, shape index: {}]   ;;  %s598_s6 = inlined_call_operand.vmem [shape: f32[32,128], index: 6, kind: output, shape index: {0}]   ;;  %s599_s7 = inlined_call_operand.vmem [shape: f32[1,32,2], index: 7, kind: output, shape index: {1}]  }
   0x1   :  { %v32_v0 = vld [vmem:[%s592_s0 + $0x18] sm:$0xff]  ;;  %v31_v1 = vld [vmem:[%s592_s0 + $0x10] sm:$0xff]  ;;  %v30_v2 = vld [vmem:[%s592_s0 + $0x8] sm:$0xff]  ;;  %417 = vset.pattern.permute.xlu0 %v428_v28  ;;  %418 = vset.pattern.permute.xlu1 %v428_v28 }
   0x2   :  { %v40_v3 = vmul.f32 0.017857144, %v32_v0  ;;  %v479_v4 = vmul.f32 0.017857144, %v31_v1  ;;  %v481_v5 = vmul.f32 0.017857144, %v30_v2 }
   0x3   :  { %v29_v6 = vld [vmem:[%s592_s0] sm:$0xff]  ;;  %s429_s0 = smov 127   ;;  %v72_v33 = vld [vmem:[%s593_s1 + $0x18] sm:$0xff]  ;;  %v70_v36 = vld [vmem:[%s593_s1 + $0x8] sm:$0xff] }
   0x4   :  { %v44_v7 = vmul.f32 %v40_v3, %v40_v3  ;;  %v42_v8 = vmul.f32 %v481_v5, %v481_v5  ;;  %v488_v9 = vmul.f32 0.017857144, %v29_v6  ;;  %v43_v10 = vmul.f32 %v479_v4, %v479_v4  ;;  %v71_v37 = vld [vmem:[%s593_s1 + $0x10] sm:$0xff]  ;;  %v69_v43 = vld [vmem:[%s593_s1] sm:$0xff]  ;;  %v104_v44 = vld [vmem:[%s594_s2 + $0x18] sm:$0xff] }
   0x5   :  { %v103_v49 = vld [vmem:[%s594_s2 + $0x10] sm:$0xff]  ;;  %v101_v50 = vld [vmem:[%s594_s2] sm:$0xff]  ;;  %v102_v55 = vld [vmem:[%s594_s2 + $0x8] sm:$0xff] }
   0x6   :  { %55 = vrot.lane.b32.xlu0 %v44_v7, %s427_s9  ;;  %51 = vrot.lane.b32.xlu1 %v42_v8, %s427_s9  ;;  %v41_v11 = vmul.f32 %v488_v9, %v488_v9  ;;  %v170_v56 = vld [vmem:[%s595_s4 + $0x8] sm:$0xff]  ;;  %v169_v58 = vld [vmem:[%s595_s4] sm:$0xff] }
   0x7   :  { %v172_v59 = vld [vmem:[%s595_s4 + $0x18] sm:$0xff]  ;;  %v165_v60 = vld [vmem:[%s596_s3] sm:$0xff]  ;;  %v167_v61 = vld [vmem:[%s596_s3 + $0x10] sm:$0xff] }
   0x8   :  { %400 = vmatprep.mubr.msk.f32.mxu0 %vm193_vm0, %v165_v60  ;;  %403 = vmatprep.mubr.msk.f32.mxu1 %vm193_vm0, %v167_v61  ;;  %v171_v62 = vld [vmem:[%s595_s4 + $0x10] sm:$0xff]  ;;  %v28_v0 = vld [vmem:[%s597_s5 + $0x18] sm:$0xff] }
   0xa   :  { %53 = vrot.lane.b32.xlu0 %v43_v10, %s427_s9  ;;  %49 = vrot.lane.b32.xlu1 %v41_v11, %s427_s9  ;;  %v26_v10 = vld [vmem:[%s597_s5 + $0x8] sm:$0xff]  ;;  %v25_v11 = vld [vmem:[%s597_s5] sm:$0xff] }
  0x78   :  { %v56_v12 = vpop.permute.xlu0 %55  ;;  %v52_v13 = vpop.permute.xlu1 %51 }
  0x79   :  { %v64_v14 = vsub.f32 %v40_v3, %v56_v12  ;;  %v62_v15 = vsub.f32 %v481_v5, %v52_v13 }
  0x7b   :  { %v68_v16 = vmax.f32 %v64_v14, 0.0  ;;  %v66_v17 = vmax.f32 %v62_v15, 0.0 }
  0x7c   :  { %v54_v18 = vpop.permute.xlu0 %53  ;;  %v50_v19 = vpop.permute.xlu1 %49 }
  0x7d   :  { %v76_v20 = vadd.f32 1e-05, %v68_v16  ;;  %v63_v21 = vsub.f32 %v479_v4, %v54_v18  ;;  %v74_v22 = vadd.f32 1e-05, %v66_v17  ;;  %v61_v23 = vsub.f32 %v488_v9, %v50_v19 }
  0x7f   :  { %419 = vrsqrt.f32 %v76_v20  ;;  %v67_v24 = vmax.f32 %v63_v21, 0.0  ;;  %v65_v25 = vmax.f32 %v61_v23, 0.0  ;;  %v166_v23 = vld [vmem:[%s596_s3 + $0x8] sm:$0xff] }
  0x80   :  { %421 = vrsqrt.f32 %v74_v22 }
  0x81   :  { %v75_v26 = vadd.f32 1e-05, %v67_v24  ;;  %v73_v27 = vadd.f32 1e-05, %v65_v25  ;;  %v168_v24 = vld [vmem:[%s596_s3 + $0x18] sm:$0xff]  ;;  %v333_v25 = vlaneseq }
  0x83   :  { %423 = vrsqrt.f32 %v75_v26  ;;  %v334_v28 = vand.u32 127, %v333_v25 }
  0x84   :  { %425 = vrsqrt.f32 %v73_v27 }
  0x85   :  { %vm335_vm1 = vcmp.lt.s32.totalorder %v334_v28, 56 }
  0x8c   :  { %v420_v29 = vpop.eup %419 }
  0x8d   :  { %91 = vrot.lane.b32.xlu0 %v420_v29, %s429_s0  ;;  %v422_v30 = vpop.eup %421 }
  0x90   :  { %v424_v31 = vpop.eup %423 }
  0x91   :  { %87 = vrot.lane.b32.xlu0 %v422_v30, %s429_s0  ;;  %89 = vrot.lane.b32.xlu1 %v424_v31, %s429_s0  ;;  %v426_v32 = vpop.eup %425 }
  0x95   :  { %85 = vrot.lane.b32.xlu1 %v426_v32, %s429_s0 }
  0xff   :  { %v92_v34 = vpop.permute.xlu0 %91 }
 0x100   :  { %v100_v35 = vmul.f32 %v92_v34, %v72_v33 }
 0x102   :  { %130 = vperm.xlu0 %417, %v100_v35   ;;  %v108_v40 = vmul.f32 %v100_v35, %v40_v3 }
 0x103   :  { %v88_v38 = vpop.permute.xlu0 %87  ;;  %v90_v39 = vpop.permute.xlu1 %89 }
 0x104   :  { %v98_v41 = vmul.f32 %v88_v38, %v70_v36  ;;  %v99_v42 = vmul.f32 %v90_v39, %v71_v37  ;;  %v112_v48 = vsub.f32 %v104_v44, %v108_v40 }
 0x106   :  { %120 = vperm.xlu0 %417, %v98_v41   ;;  %125 = vperm.xlu1 %418, %v99_v42   ;;  %v107_v46 = vmul.f32 %v99_v42, %v479_v4  ;;  %v106_v52 = vmul.f32 %v98_v41, %v481_v5  ;;  %v27_v4 = vld [vmem:[%s597_s5 + $0x10] sm:$0xff] }
 0x107   :  { %v86_v45 = vpop.permute.xlu1 %85 }
 0x108   :  { %v97_v47 = vmul.f32 %v86_v45, %v69_v43  ;;  %v111_v53 = vsub.f32 %v103_v49, %v107_v46  ;;  %v110_v57 = vsub.f32 %v102_v55, %v106_v52 }
 0x10a   :  { %v105_v51 = vmul.f32 %v97_v47, %v488_v9  ;;  %154 = vperm.xlu1 %418, %v112_v48   ;;  %115 = vperm.xlu0 %417, %v97_v47  }
 0x10c   :  { %v109_v54 = vsub.f32 %v101_v50, %v105_v51 }
 0x10e   :  { %149 = vperm.xlu1 %418, %v111_v53   ;;  %139 = vperm.xlu0 %417, %v109_v54  }
 0x112   :  { %144 = vperm.xlu1 %418, %v110_v57   ;;  %180 = vperm.xlu0 %417, %v170_v56  }
 0x116   :  { %175 = vperm.xlu1 %418, %v169_v58   ;;  %190 = vperm.xlu0 %417, %v172_v59  }
 0x11a   :  { %185 = vperm.xlu1 %418, %v171_v62  }
 0x17d   :  { %v131_v63 = vpop.permute.xlu0 %130 }
 0x17e   :  { %v136_v3 = vmul.f32 %v131_v63, %v28_v0 }
 0x181   :  { %v121_v1 = vpop.permute.xlu0 %120  ;;  %v126_v2 = vpop.permute.xlu1 %125 }
 0x182   :  { %v135_v8 = vmul.f32 %v126_v2, %v27_v4  ;;  %v134_v15 = vmul.f32 %v121_v1, %v26_v10 }
 0x185   :  { %v116_v5 = vpop.permute.xlu0 %115  ;;  %v155_v6 = vpop.permute.xlu1 %154 }
 0x186   :  { %v160_v7 = vadd.f32 %v155_v6, %v136_v3  ;;  %v133_v16 = vmul.f32 %v116_v5, %v25_v11 }
 0x188   :  { %v164_v9 = vmax.f32 %v160_v7, 0.0 }
 0x189   :  { %v150_v12 = vpop.permute.xlu1 %149  ;;  %v140_v14 = vpop.permute.xlu0 %139 }
 0x18a   :  { %v159_v13 = vadd.f32 %v150_v12, %v135_v8  ;;  %392 = vmatprep.subr.mxu0 %v164_v9  ;;  %406 = vmatprep.subr.mxu1 %v164_v9  ;;  %v157_v19 = vadd.f32 %v140_v14, %v133_v16 }
 0x18b   :  { %393 = vmatpush3.msra.mxu0 %v164_v9  ;;  %410 = vmatpush3.msra.mxu1 %v164_v9 }
 0x18c   :  { %v163_v17 = vmax.f32 %v159_v13, 0.0  ;;  %v161_v22 = vmax.f32 %v157_v19, 0.0 }
 0x18d   :  { %v145_v18 = vpop.permute.xlu1 %144  ;;  %v181_v26 = vpop.permute.xlu0 %180 }
 0x18e   :  { %v158_v20 = vadd.f32 %v145_v18, %v134_v15  ;;  %394 = vmatprep.subr.mxu0 %v163_v17  ;;  %407 = vmatprep.subr.mxu1 %v163_v17 }
 0x18f   :  { %395 = vmatpush3.msra.mxu0 %v163_v17  ;;  %411 = vmatpush3.msra.mxu1 %v163_v17 }
 0x190   :  { %v162_v21 = vmax.f32 %v158_v20, 0.0 }
 0x191   :  { %v176_v27 = vpop.permute.xlu1 %175  ;;  %v191_v29 = vpop.permute.xlu0 %190 }
 0x192   :  { %396 = vmatprep.subr.mxu0 %v162_v21  ;;  %408 = vmatprep.subr.mxu1 %v162_v21 }
 0x193   :  { %397 = vmatpush3.msra.mxu0 %v162_v21  ;;  %412 = vmatpush3.msra.mxu1 %v162_v21 }
 0x194   :  { %398 = vmatprep.subr.mxu0 %v161_v22  ;;  %409 = vmatprep.subr.mxu1 %v161_v22 }
 0x195   :  { %399 = vmatpush3.msra.mxu0 %v161_v22  ;;  %413 = vmatpush3.msra.mxu1 %v161_v22  ;;  %v186_v32 = vpop.permute.xlu1 %185 }
 0x196   :  { %401 = vmatmul.mubr.msk.f32.vlgmr.msra.gmra.mxu0 %vm193_vm0, %v166_v23  ;;  %404 = vmatmul.mubr.msk.f32.vlgmr.msra.gmra.mxu1 %vm193_vm0, %v168_v24 }
 0x256   :  { %v402_v30 = vpop.f32.mrf.mxu0  ;;  %v405_v31 = vpop.f32.mrf.mxu1 }
 0x257   :  { %v278_v33 = vadd.f32 %v402_v30, %v181_v26  ;;  %v288_v34 = vadd.f32 %v405_v31, %v191_v29 }
 0x258   :  { %v272_v35 = vpop.f32.mrf.mxu0  ;;  %v282_v36 = vpop.f32.mrf.mxu1 }
 0x259   :  { %292 = vst [vmem:[%s598_s6 + $0x8] sm:$0xff] %v278_v33  ;;  %294 = vst [vmem:[%s598_s6 + $0x18] sm:$0xff] %v288_v34  ;;  %v273_v37 = vadd.f32 %v272_v35, %v176_v27  ;;  %v283_v38 = vadd.f32 %v282_v36, %v186_v32  ;;  %v341_v39 = vsel %vm335_vm1, %v288_v34, 0.0  ;;  %v339_v40 = vsel %vm335_vm1, %v278_v33, 0.0 }
 0x25a   :  { %348 = vadd.xlane.f32.xlu1 %v341_v39  ;;  %344 = vadd.xlane.f32.xlu0 %v339_v40  ;;  %v351_v43 = vmul.f32 %v339_v40, %v278_v33  ;;  %v353_v45 = vmul.f32 %v341_v39, %v288_v34 }
 0x25b   :  { %291 = vst [vmem:[%s598_s6] sm:$0xff] %v273_v37  ;;  %293 = vst [vmem:[%s598_s6 + $0x10] sm:$0xff] %v283_v38  ;;  %v338_v41 = vsel %vm335_vm1, %v273_v37, 0.0  ;;  %v340_v42 = vsel %vm335_vm1, %v283_v38, 0.0 }
 0x25c   :  { %v350_v44 = vmul.f32 %v338_v41, %v273_v37  ;;  %v352_v46 = vmul.f32 %v340_v42, %v283_v38 }
 0x25e   :  { %342 = vadd.xlane.f32.xlu1 %v338_v41  ;;  %346 = vadd.xlane.f32.xlu0 %v340_v42 }
 0x262   :  { %356 = vadd.xlane.f32.xlu1 %v351_v43  ;;  %354 = vadd.xlane.f32.xlu0 %v350_v44 }
 0x266   :  { %360 = vadd.xlane.f32.xlu1 %v353_v45  ;;  %358 = vadd.xlane.f32.xlu0 %v352_v46 }
 0x2e3   :  { %v345_v47 = vpop.xlane.xlu0 %344  ;;  %v349_v48 = vpop.xlane.xlu1 %348 }
 0x2e7   :  { %v347_v49 = vpop.xlane.xlu0 %346  ;;  %v343_v50 = vpop.xlane.xlu1 %342 }
 0x2eb   :  { %v355_v51 = vpop.xlane.xlu0 %354  ;;  %v357_v52 = vpop.xlane.xlu1 %356 }
 0x2ec   :  { %v363_v53 = vsel %vm362_vm2, %v343_v50, %v355_v51  ;;  %v364_v54 = vsel %vm362_vm2, %v345_v47, %v357_v52 }
 0x2ed   :  { %368 = vst.msk [vmem:[%s599_s7] sm:$0xff] %vm367_vm3, %v363_v53  ;;  %369 = vst.msk [vmem:[%s599_s7 + $0x8] sm:$0xff] %vm367_vm3, %v364_v54 }
 0x2ef   :  { %v359_v55 = vpop.xlane.xlu0 %358  ;;  %v361_v56 = vpop.xlane.xlu1 %360 }
 0x2f0   :  { %v365_v57 = vsel %vm362_vm2, %v347_v49, %v359_v55  ;;  %v366_v58 = vsel %vm362_vm2, %v349_v48, %v361_v56 }
 0x2f1   :  { %370 = vst.msk [vmem:[%s599_s7 + $0x10] sm:$0xff] %vm367_vm3, %v365_v57  ;;  %371 = vst.msk [vmem:[%s599_s7 + $0x18] sm:$0xff] %vm367_vm3, %v366_v58 }

// kernel: net_forward.8
= control target key start
LH: loop header
LB: loop body
LE: loop exit
PB: predicated region body
PF: predicated region fallthrough
CT: control target
= control target key end

     0   :  { %s438_s13 = smov 1   ;;  %v439_v28 = vmov 0   ;;  %vm196_vm0 = vcmask 261120   ;;  %vm373_vm2 = vcmask 7168   ;;  %vm378_vm3 = vcmask 15360   ;;  %s620_s0 = inlined_call_operand.vmem [shape: f32[1,32,2], index: 0, kind: input, shape index: {}]   ;;  %s621_s1 = inlined_call_operand.vmem [shape: f32[32,1], index: 1, kind: input, shape index: {}]   ;;  %s622_s2 = inlined_call_operand.vmem [shape: f32[32,1], index: 2, kind: input, shape index: {}]   ;;  %s623_s4 = inlined_call_operand.vmem [shape: f32[32,1], index: 4, kind: input, shape index: {}]   ;;  %s624_s3 = inlined_call_operand.vmem [shape: f32[32,32], index: 3, kind: input, shape index: {}]   ;;  %s625_s5 = inlined_call_operand.vmem [shape: f32[32,128], index: 5, kind: input, shape index: {}]   ;;  %s626_s6 = inlined_call_operand.vmem [shape: f32[32,128], index: 6, kind: input, shape index: {}, may-alias: {6,7}]   ;;  %s627_s7 = inlined_call_operand.vmem [shape: f32[32,128], index: 7, kind: output, shape index: {0}, may-alias: {6,7}]   ;;  %s628_s8 = inlined_call_operand.vmem [shape: f32[1,32,2], index: 8, kind: output, shape index: {1}]  }
   0x1   :  { %v35_v0 = vld [vmem:[%s620_s0 + $0x18] sm:$0xff]  ;;  %v34_v1 = vld [vmem:[%s620_s0 + $0x10] sm:$0xff]  ;;  %v33_v2 = vld [vmem:[%s620_s0 + $0x8] sm:$0xff]  ;;  %428 = vset.pattern.permute.xlu0 %v439_v28  ;;  %429 = vset.pattern.permute.xlu1 %v439_v28 }
   0x2   :  { %v43_v3 = vmul.f32 0.017857144, %v35_v0  ;;  %v495_v4 = vmul.f32 0.017857144, %v34_v1  ;;  %v497_v5 = vmul.f32 0.017857144, %v33_v2 }
   0x3   :  { %v32_v6 = vld [vmem:[%s620_s0] sm:$0xff]  ;;  %s440_s0 = smov 127   ;;  %v75_v33 = vld [vmem:[%s621_s1 + $0x18] sm:$0xff]  ;;  %v73_v36 = vld [vmem:[%s621_s1 + $0x8] sm:$0xff] }
   0x4   :  { %v47_v7 = vmul.f32 %v43_v3, %v43_v3  ;;  %v45_v8 = vmul.f32 %v497_v5, %v497_v5  ;;  %v504_v9 = vmul.f32 0.017857144, %v32_v6  ;;  %v46_v10 = vmul.f32 %v495_v4, %v495_v4  ;;  %v74_v37 = vld [vmem:[%s621_s1 + $0x10] sm:$0xff]  ;;  %v72_v43 = vld [vmem:[%s621_s1] sm:$0xff]  ;;  %v107_v44 = vld [vmem:[%s622_s2 + $0x18] sm:$0xff] }
   0x5   :  { %v106_v49 = vld [vmem:[%s622_s2 + $0x10] sm:$0xff]  ;;  %v104_v50 = vld [vmem:[%s622_s2] sm:$0xff]  ;;  %v105_v55 = vld [vmem:[%s622_s2 + $0x8] sm:$0xff] }
   0x6   :  { %58 = vrot.lane.b32.xlu0 %v47_v7, %s438_s13  ;;  %54 = vrot.lane.b32.xlu1 %v45_v8, %s438_s13  ;;  %v44_v11 = vmul.f32 %v504_v9, %v504_v9  ;;  %v173_v56 = vld [vmem:[%s623_s4 + $0x8] sm:$0xff]  ;;  %v172_v58 = vld [vmem:[%s623_s4] sm:$0xff] }
   0x7   :  { %v175_v59 = vld [vmem:[%s623_s4 + $0x18] sm:$0xff]  ;;  %v168_v60 = vld [vmem:[%s624_s3] sm:$0xff]  ;;  %v170_v61 = vld [vmem:[%s624_s3 + $0x10] sm:$0xff] }
   0x8   :  { %411 = vmatprep.mubr.msk.f32.mxu0 %vm196_vm0, %v168_v60  ;;  %414 = vmatprep.mubr.msk.f32.mxu1 %vm196_vm0, %v170_v61  ;;  %v174_v62 = vld [vmem:[%s623_s4 + $0x10] sm:$0xff]  ;;  %v31_v0 = vld [vmem:[%s625_s5 + $0x18] sm:$0xff] }
   0xa   :  { %56 = vrot.lane.b32.xlu0 %v46_v10, %s438_s13  ;;  %52 = vrot.lane.b32.xlu1 %v44_v11, %s438_s13  ;;  %v29_v10 = vld [vmem:[%s625_s5 + $0x8] sm:$0xff]  ;;  %v28_v11 = vld [vmem:[%s625_s5] sm:$0xff] }
  0x78   :  { %v59_v12 = vpop.permute.xlu0 %58  ;;  %v55_v13 = vpop.permute.xlu1 %54 }
  0x79   :  { %v67_v14 = vsub.f32 %v43_v3, %v59_v12  ;;  %v65_v15 = vsub.f32 %v497_v5, %v55_v13 }
  0x7b   :  { %v71_v16 = vmax.f32 %v67_v14, 0.0  ;;  %v69_v17 = vmax.f32 %v65_v15, 0.0 }
  0x7c   :  { %v57_v18 = vpop.permute.xlu0 %56  ;;  %v53_v19 = vpop.permute.xlu1 %52 }
  0x7d   :  { %v79_v20 = vadd.f32 1e-05, %v71_v16  ;;  %v66_v21 = vsub.f32 %v495_v4, %v57_v18  ;;  %v77_v22 = vadd.f32 1e-05, %v69_v17  ;;  %v64_v23 = vsub.f32 %v504_v9, %v53_v19 }
  0x7f   :  { %430 = vrsqrt.f32 %v79_v20  ;;  %v70_v24 = vmax.f32 %v66_v21, 0.0  ;;  %v68_v25 = vmax.f32 %v64_v23, 0.0  ;;  %v169_v23 = vld [vmem:[%s624_s3 + $0x8] sm:$0xff] }
  0x80   :  { %432 = vrsqrt.f32 %v77_v22 }
  0x81   :  { %v78_v26 = vadd.f32 1e-05, %v70_v24  ;;  %v76_v27 = vadd.f32 1e-05, %v68_v25  ;;  %v171_v24 = vld [vmem:[%s624_s3 + $0x18] sm:$0xff] }
  0x83   :  { %434 = vrsqrt.f32 %v78_v26  ;;  %v344_v26 = vlaneseq }
  0x84   :  { %436 = vrsqrt.f32 %v76_v27 }
  0x85   :  { %v345_v28 = vand.u32 127, %v344_v26 }
  0x87   :  { %vm346_vm1 = vcmp.lt.s32.totalorder %v345_v28, 56 }
  0x8c   :  { %v431_v29 = vpop.eup %430 }
  0x8d   :  { %94 = vrot.lane.b32.xlu0 %v431_v29, %s440_s0  ;;  %v433_v30 = vpop.eup %432 }
  0x90   :  { %v435_v31 = vpop.eup %434 }
  0x91   :  { %90 = vrot.lane.b32.xlu0 %v433_v30, %s440_s0  ;;  %92 = vrot.lane.b32.xlu1 %v435_v31, %s440_s0  ;;  %v437_v32 = vpop.eup %436  ;;  %v295_v31 = vld [vmem:[%s626_s6 + $0x8] sm:$0xff] }
  0x95   :  { %88 = vrot.lane.b32.xlu1 %v437_v32, %s440_s0 }
  0xff   :  { %v95_v34 = vpop.permute.xlu0 %94 }
 0x100   :  { %v103_v35 = vmul.f32 %v95_v34, %v75_v33  ;;  %v297_v33 = vld [vmem:[%s626_s6 + $0x18] sm:$0xff] }
 0x102   :  { %133 = vperm.xlu0 %428, %v103_v35   ;;  %v111_v40 = vmul.f32 %v103_v35, %v43_v3 }
 0x103   :  { %v91_v38 = vpop.permute.xlu0 %90  ;;  %v93_v39 = vpop.permute.xlu1 %92 }
 0x104   :  { %v101_v41 = vmul.f32 %v91_v38, %v73_v36  ;;  %v102_v42 = vmul.f32 %v93_v39, %v74_v37  ;;  %v115_v48 = vsub.f32 %v107_v44, %v111_v40  ;;  %v294_v38 = vld [vmem:[%s626_s6] sm:$0xff]  ;;  %v296_v40 = vld [vmem:[%s626_s6 + $0x10] sm:$0xff] }
 0x106   :  { %123 = vperm.xlu0 %428, %v101_v41   ;;  %128 = vperm.xlu1 %429, %v102_v42   ;;  %v110_v46 = vmul.f32 %v102_v42, %v495_v4  ;;  %v109_v52 = vmul.f32 %v101_v41, %v497_v5  ;;  %v30_v4 = vld [vmem:[%s625_s5 + $0x10] sm:$0xff] }
 0x107   :  { %v89_v45 = vpop.permute.xlu1 %88 }
 0x108   :  { %v100_v47 = vmul.f32 %v89_v45, %v72_v43  ;;  %v114_v53 = vsub.f32 %v106_v49, %v110_v46  ;;  %v113_v57 = vsub.f32 %v105_v55, %v109_v52 }
 0x10a   :  { %v108_v51 = vmul.f32 %v100_v47, %v504_v9  ;;  %157 = vperm.xlu1 %429, %v115_v48   ;;  %118 = vperm.xlu0 %428, %v100_v47  }
 0x10c   :  { %v112_v54 = vsub.f32 %v104_v50, %v108_v51 }
 0x10e   :  { %152 = vperm.xlu1 %429, %v114_v53   ;;  %142 = vperm.xlu0 %428, %v112_v54  }
 0x112   :  { %147 = vperm.xlu1 %429, %v113_v57   ;;  %183 = vperm.xlu0 %428, %v173_v56  }
 0x116   :  { %178 = vperm.xlu1 %429, %v172_v58   ;;  %193 = vperm.xlu0 %428, %v175_v59  }
 0x11a   :  { %188 = vperm.xlu1 %429, %v174_v62  }
 0x17d   :  { %v134_v63 = vpop.permute.xlu0 %133 }
 0x17e   :  { %v139_v3 = vmul.f32 %v134_v63, %v31_v0 }
 0x181   :  { %v124_v1 = vpop.permute.xlu0 %123  ;;  %v129_v2 = vpop.permute.xlu1 %128 }
 0x182   :  { %v138_v8 = vmul.f32 %v129_v2, %v30_v4  ;;  %v137_v15 = vmul.f32 %v124_v1, %v29_v10 }
 0x185   :  { %v119_v5 = vpop.permute.xlu0 %118  ;;  %v158_v6 = vpop.permute.xlu1 %157 }
 0x186   :  { %v163_v7 = vadd.f32 %v158_v6, %v139_v3  ;;  %v136_v16 = vmul.f32 %v119_v5, %v28_v11 }
 0x188   :  { %v167_v9 = vmax.f32 %v163_v7, 0.0 }
 0x189   :  { %v153_v12 = vpop.permute.xlu1 %152  ;;  %v143_v14 = vpop.permute.xlu0 %142 }
 0x18a   :  { %v162_v13 = vadd.f32 %v153_v12, %v138_v8  ;;  %403 = vmatprep.subr.mxu0 %v167_v9  ;;  %417 = vmatprep.subr.mxu1 %v167_v9  ;;  %v160_v19 = vadd.f32 %v143_v14, %v136_v16 }
 0x18b   :  { %404 = vmatpush3.msra.mxu0 %v167_v9  ;;  %421 = vmatpush3.msra.mxu1 %v167_v9 }
 0x18c   :  { %v166_v17 = vmax.f32 %v162_v13, 0.0  ;;  %v164_v22 = vmax.f32 %v160_v19, 0.0 }
 0x18d   :  { %v148_v18 = vpop.permute.xlu1 %147  ;;  %v184_v25 = vpop.permute.xlu0 %183 }
 0x18e   :  { %v161_v20 = vadd.f32 %v148_v18, %v137_v15  ;;  %405 = vmatprep.subr.mxu0 %v166_v17  ;;  %418 = vmatprep.subr.mxu1 %v166_v17 }
 0x18f   :  { %406 = vmatpush3.msra.mxu0 %v166_v17  ;;  %422 = vmatpush3.msra.mxu1 %v166_v17 }
 0x190   :  { %v165_v21 = vmax.f32 %v161_v20, 0.0 }
 0x191   :  { %v179_v27 = vpop.permute.xlu1 %178  ;;  %v194_v29 = vpop.permute.xlu0 %193 }
 0x192   :  { %407 = vmatprep.subr.mxu0 %v165_v21  ;;  %419 = vmatprep.subr.mxu1 %v165_v21 }
 0x193   :  { %408 = vmatpush3.msra.mxu0 %v165_v21  ;;  %423 = vmatpush3.msra.mxu1 %v165_v21 }
 0x194   :  { %409 = vmatprep.subr.mxu0 %v164_v22  ;;  %420 = vmatprep.subr.mxu1 %v164_v22 }
 0x195   :  { %410 = vmatpush3.msra.mxu0 %v164_v22  ;;  %424 = vmatpush3.msra.mxu1 %v164_v22  ;;  %v189_v34 = vpop.permute.xlu1 %188 }
 0x196   :  { %412 = vmatmul.mubr.msk.f32.vlgmr.msra.gmra.mxu0 %vm196_vm0, %v169_v23  ;;  %415 = vmatmul.mubr.msk.f32.vlgmr.msra.gmra.mxu1 %vm196_vm0, %v171_v24 }
 0x256   :  { %v413_v30 = vpop.f32.mrf.mxu0  ;;  %v416_v32 = vpop.f32.mrf.mxu1 }
 0x257   :  { %v281_v35 = vadd.f32 %v413_v30, %v184_v25  ;;  %v291_v36 = vadd.f32 %v416_v32, %v194_v29 }
 0x258   :  { %v275_v37 = vpop.f32.mrf.mxu0  ;;  %v285_v39 = vpop.f32.mrf.mxu1 }
 0x259   :  { %v299_v41 = vadd.f32 %v295_v31, %v281_v35  ;;  %v301_v42 = vadd.f32 %v297_v33, %v291_v36  ;;  %v276_v43 = vadd.f32 %v275_v37, %v179_v27  ;;  %v286_v44 = vadd.f32 %v285_v39, %v189_v34 }
 0x25b   :  { %303 = vst [vmem:[%s627_s7 + $0x8] sm:$0xff] %v299_v41  ;;  %305 = vst [vmem:[%s627_s7 + $0x18] sm:$0xff] %v301_v42  ;;  %v298_v45 = vadd.f32 %v294_v38, %v276_v43  ;;  %v300_v46 = vadd.f32 %v296_v40, %v286_v44  ;;  %v352_v47 = vsel %vm346_vm1, %v301_v42, 0.0  ;;  %v350_v48 = vsel %vm346_vm1, %v299_v41, 0.0 }
 0x25c   :  { %359 = vadd.xlane.f32.xlu1 %v352_v47  ;;  %355 = vadd.xlane.f32.xlu0 %v350_v48  ;;  %v362_v51 = vmul.f32 %v350_v48, %v299_v41  ;;  %v364_v53 = vmul.f32 %v352_v47, %v301_v42 }
 0x25d   :  { %302 = vst [vmem:[%s627_s7] sm:$0xff] %v298_v45  ;;  %304 = vst [vmem:[%s627_s7 + $0x10] sm:$0xff] %v300_v46  ;;  %v349_v49 = vsel %vm346_vm1, %v298_v45, 0.0  ;;  %v351_v50 = vsel %vm346_vm1, %v300_v46, 0.0 }
 0x25e   :  { %v361_v52 = vmul.f32 %v349_v49, %v298_v45  ;;  %v363_v54 = vmul.f32 %v351_v50, %v300_v46 }
 0x260   :  { %353 = vadd.xlane.f32.xlu1 %v349_v49  ;;  %357 = vadd.xlane.f32.xlu0 %v351_v50 }
 0x264   :  { %367 = vadd.xlane.f32.xlu1 %v362_v51  ;;  %365 = vadd.xlane.f32.xlu0 %v361_v52 }
 0x268   :  { %371 = vadd.xlane.f32.xlu1 %v364_v53  ;;  %369 = vadd.xlane.f32.xlu0 %v363_v54 }
 0x2e5   :  { %v356_v55 = vpop.xlane.xlu0 %355  ;;  %v360_v56 = vpop.xlane.xlu1 %359 }
 0x2e9   :  { %v358_v57 = vpop.xlane.xlu0 %357  ;;  %v354_v58 = vpop.xlane.xlu1 %353 }
 0x2ed   :  { %v366_v59 = vpop.xlane.xlu0 %365  ;;  %v368_v60 = vpop.xlane.xlu1 %367 }
 0x2ee   :  { %v374_v61 = vsel %vm373_vm2, %v354_v58, %v366_v59  ;;  %v375_v62 = vsel %vm373_vm2, %v356_v55, %v368_v60 }
 0x2ef   :  { %379 = vst.msk [vmem:[%s628_s8] sm:$0xff] %vm378_vm3, %v374_v61  ;;  %380 = vst.msk [vmem:[%s628_s8 + $0x8] sm:$0xff] %vm378_vm3, %v375_v62 }
 0x2f1   :  { %v370_v63 = vpop.xlane.xlu0 %369  ;;  %v372_v0 = vpop.xlane.xlu1 %371 }
 0x2f2   :  { %v376_v1 = vsel %vm373_vm2, %v358_v57, %v370_v63  ;;  %v377_v2 = vsel %vm373_vm2, %v360_v56, %v372_v0 }
 0x2f3   :  { %381 = vst.msk [vmem:[%s628_s8 + $0x10] sm:$0xff] %vm378_vm3, %v376_v1  ;;  %382 = vst.msk [vmem:[%s628_s8 + $0x18] sm:$0xff] %vm378_vm3, %v377_v2 }

// kernel: net_forward.11
= control target key start
LH: loop header
LB: loop body
LE: loop exit
PB: predicated region body
PF: predicated region fallthrough
CT: control target
= control target key end

     0   :  { %s297_s29 = smov 1   ;;  %v298_v28 = vmov 0   ;;  %vm177_vm0 = vcmask 261120   ;;  %s421_s0 = inlined_call_operand.vmem [shape: f32[1,32,2], index: 0, kind: input, shape index: {}]   ;;  %s422_s1 = inlined_call_operand.vmem [shape: f32[32,1], index: 1, kind: input, shape index: {}]   ;;  %s423_s2 = inlined_call_operand.vmem [shape: f32[32,1], index: 2, kind: input, shape index: {}]   ;;  %s424_s4 = inlined_call_operand.vmem [shape: f32[16,1], index: 4, kind: input, shape index: {}]   ;;  %s425_s3 = inlined_call_operand.vmem [shape: f32[16,32], index: 3, kind: input, shape index: {}]   ;;  %s426_s5 = inlined_call_operand.vmem [shape: f32[32,128], index: 5, kind: input, shape index: {}]   ;;  %s427_s6 = inlined_call_operand.vmem [shape: f32[16,128], index: 6, kind: output, shape index: {}]  }
   0x1   :  { %v30_v0 = vld [vmem:[%s421_s0 + $0x18] sm:$0xff]  ;;  %v29_v1 = vld [vmem:[%s421_s0 + $0x10] sm:$0xff]  ;;  %v28_v2 = vld [vmem:[%s421_s0 + $0x8] sm:$0xff]  ;;  %287 = vset.pattern.permute.xlu0 %v298_v28  ;;  %288 = vset.pattern.permute.xlu1 %v298_v28 }
   0x2   :  { %v38_v3 = vmul.f32 0.017857144, %v30_v0  ;;  %v344_v4 = vmul.f32 0.017857144, %v29_v1  ;;  %v346_v5 = vmul.f32 0.017857144, %v28_v2 }
   0x3   :  { %v27_v6 = vld [vmem:[%s421_s0] sm:$0xff]  ;;  %s299_s0 = smov 127   ;;  %v70_v33 = vld [vmem:[%s422_s1 + $0x18] sm:$0xff]  ;;  %v68_v36 = vld [vmem:[%s422_s1 + $0x8] sm:$0xff] }
   0x4   :  { %v42_v7 = vmul.f32 %v38_v3, %v38_v3  ;;  %v40_v8 = vmul.f32 %v346_v5, %v346_v5  ;;  %v353_v9 = vmul.f32 0.017857144, %v27_v6  ;;  %v41_v10 = vmul.f32 %v344_v4, %v344_v4  ;;  %v69_v37 = vld [vmem:[%s422_s1 + $0x10] sm:$0xff]  ;;  %v67_v43 = vld [vmem:[%s422_s1] sm:$0xff]  ;;  %v102_v44 = vld [vmem:[%s423_s2 + $0x18] sm:$0xff] }
   0x5   :  { %v101_v49 = vld [vmem:[%s423_s2 + $0x10] sm:$0xff]  ;;  %v99_v50 = vld [vmem:[%s423_s2] sm:$0xff]  ;;  %v100_v55 = vld [vmem:[%s423_s2 + $0x8] sm:$0xff] }
   0x6   :  { %53 = vrot.lane.b32.xlu0 %v42_v7, %s297_s29  ;;  %49 = vrot.lane.b32.xlu1 %v40_v8, %s297_s29  ;;  %v39_v11 = vmul.f32 %v353_v9, %v353_v9  ;;  %v166_v56 = vld [vmem:[%s424_s4 + $0x8] sm:$0xff]  ;;  %v165_v58 = vld [vmem:[%s424_s4] sm:$0xff] }
   0x7   :  { %v163_v59 = vld [vmem:[%s425_s3] sm:$0xff]  ;;  %v26_v61 = vld [vmem:[%s426_s5 + $0x18] sm:$0xff]  ;;  %v25_v1 = vld [vmem:[%s426_s5 + $0x10] sm:$0xff] }
   0x8   :  { %281 = vmatprep.mubr.msk.f32.mxu0 %vm177_vm0, %v163_v59  ;;  %v24_v7 = vld [vmem:[%s426_s5 + $0x8] sm:$0xff]  ;;  %v23_v8 = vld [vmem:[%s426_s5] sm:$0xff] }
   0xa   :  { %51 = vrot.lane.b32.xlu0 %v41_v10, %s297_s29  ;;  %47 = vrot.lane.b32.xlu1 %v39_v11, %s297_s29 }
  0x78   :  { %v54_v12 = vpop.permute.xlu0 %53  ;;  %v50_v13 = vpop.permute.xlu1 %49 }
  0x79   :  { %v62_v14 = vsub.f32 %v38_v3, %v54_v12  ;;  %v60_v15 = vsub.f32 %v346_v5, %v50_v13 }
  0x7b   :  { %v66_v16 = vmax.f32 %v62_v14, 0.0  ;;  %v64_v17 = vmax.f32 %v60_v15, 0.0 }
  0x7c   :  { %v52_v18 = vpop.permute.xlu0 %51  ;;  %v48_v19 = vpop.permute.xlu1 %47 }
  0x7d   :  { %v74_v20 = vadd.f32 1e-05, %v66_v16  ;;  %v61_v21 = vsub.f32 %v344_v4, %v52_v18  ;;  %v72_v22 = vadd.f32 1e-05, %v64_v17  ;;  %v59_v23 = vsub.f32 %v353_v9, %v48_v19 }
  0x7f   :  { %289 = vrsqrt.f32 %v74_v20  ;;  %v65_v24 = vmax.f32 %v61_v21, 0.0  ;;  %v63_v25 = vmax.f32 %v59_v23, 0.0  ;;  %v164_v20 = vld [vmem:[%s425_s3 + $0x8] sm:$0xff] }
  0x80   :  { %291 = vrsqrt.f32 %v72_v22 }
  0x81   :  { %v73_v26 = vadd.f32 1e-05, %v65_v24  ;;  %v71_v27 = vadd.f32 1e-05, %v63_v25 }
  0x83   :  { %293 = vrsqrt.f32 %v73_v26 }
  0x84   :  { %295 = vrsqrt.f32 %v71_v27 }
  0x8c   :  { %v290_v29 = vpop.eup %289 }
  0x8d   :  { %89 = vrot.lane.b32.xlu0 %v290_v29, %s299_s0  ;;  %v292_v30 = vpop.eup %291 }
  0x90   :  { %v294_v31 = vpop.eup %293 }
  0x91   :  { %85 = vrot.lane.b32.xlu0 %v292_v30, %s299_s0  ;;  %87 = vrot.lane.b32.xlu1 %v294_v31, %s299_s0  ;;  %v296_v32 = vpop.eup %295 }
  0x95   :  { %83 = vrot.lane.b32.xlu1 %v296_v32, %s299_s0 }
  0xff   :  { %v90_v34 = vpop.permute.xlu0 %89 }
 0x100   :  { %v98_v35 = vmul.f32 %v90_v34, %v70_v33 }
 0x102   :  { %128 = vperm.xlu0 %287, %v98_v35   ;;  %v106_v40 = vmul.f32 %v98_v35, %v38_v3 }
 0x103   :  { %v86_v38 = vpop.permute.xlu0 %85  ;;  %v88_v39 = vpop.permute.xlu1 %87 }
 0x104   :  { %v96_v41 = vmul.f32 %v86_v38, %v68_v36  ;;  %v97_v42 = vmul.f32 %v88_v39, %v69_v37  ;;  %v110_v48 = vsub.f32 %v102_v44, %v106_v40 }
 0x106   :  { %118 = vperm.xlu0 %287, %v96_v41   ;;  %123 = vperm.xlu1 %288, %v97_v42   ;;  %v105_v46 = vmul.f32 %v97_v42, %v344_v4  ;;  %v104_v52 = vmul.f32 %v96_v41, %v346_v5 }
 0x107   :  { %v84_v45 = vpop.permute.xlu1 %83 }
 0x108   :  { %v95_v47 = vmul.f32 %v84_v45, %v67_v43  ;;  %v109_v53 = vsub.f32 %v101_v49, %v105_v46  ;;  %v108_v57 = vsub.f32 %v100_v55, %v104_v52 }
 0x10a   :  { %v103_v51 = vmul.f32 %v95_v47, %v353_v9  ;;  %152 = vperm.xlu1 %288, %v110_v48   ;;  %113 = vperm.xlu0 %287, %v95_v47  }
 0x10c   :  { %v107_v54 = vsub.f32 %v99_v50, %v103_v51 }
 0x10e   :  { %147 = vperm.xlu1 %288, %v109_v53   ;;  %137 = vperm.xlu0 %287, %v107_v54  }
 0x112   :  { %142 = vperm.xlu1 %288, %v108_v57   ;;  %174 = vperm.xlu0 %287, %v166_v56  }
 0x116   :  { %169 = vperm.xlu1 %288, %v165_v58  }
 0x17d   :  { %v129_v60 = vpop.permute.xlu0 %128 }
 0x17e   :  { %v134_v0 = vmul.f32 %v129_v60, %v26_v61 }
 0x181   :  { %v119_v62 = vpop.permute.xlu0 %118  ;;  %v124_v63 = vpop.permute.xlu1 %123 }
 0x182   :  { %v133_v5 = vmul.f32 %v124_v63, %v25_v1  ;;  %v132_v12 = vmul.f32 %v119_v62, %v24_v7 }
 0x185   :  { %v114_v2 = vpop.permute.xlu0 %113  ;;  %v153_v3 = vpop.permute.xlu1 %152 }
 0x186   :  { %v158_v4 = vadd.f32 %v153_v3, %v134_v0  ;;  %v131_v13 = vmul.f32 %v114_v2, %v23_v8 }
 0x188   :  { %v162_v6 = vmax.f32 %v158_v4, 0.0 }
 0x189   :  { %v148_v9 = vpop.permute.xlu1 %147  ;;  %v138_v11 = vpop.permute.xlu0 %137 }
 0x18a   :  { %v157_v10 = vadd.f32 %v148_v9, %v133_v5  ;;  %273 = vmatprep.subr.mxu0 %v162_v6  ;;  %v155_v16 = vadd.f32 %v138_v11, %v131_v13 }
 0x18b   :  { %274 = vmatpush3.msra.mxu0 %v162_v6 }
 0x18c   :  { %v161_v14 = vmax.f32 %v157_v10, 0.0  ;;  %v159_v19 = vmax.f32 %v155_v16, 0.0 }
 0x18d   :  { %v143_v15 = vpop.permute.xlu1 %142  ;;  %v175_v21 = vpop.permute.xlu0 %174 }
 0x18e   :  { %v156_v17 = vadd.f32 %v143_v15, %v132_v12  ;;  %275 = vmatprep.subr.mxu0 %v161_v14 }
 0x18f   :  { %276 = vmatpush3.msra.mxu0 %v161_v14 }
 0x190   :  { %v160_v18 = vmax.f32 %v156_v17, 0.0 }
 0x191   :  { %v170_v24 = vpop.permute.xlu1 %169 }
 0x192   :  { %277 = vmatprep.subr.mxu0 %v160_v18 }
 0x193   :  { %278 = vmatpush3.msra.mxu0 %v160_v18 }
 0x194   :  { %279 = vmatprep.subr.mxu0 %v159_v19 }
 0x195   :  { %280 = vmatpush3.msra.mxu0 %v159_v19 }
 0x196   :  { %282 = vmatmul.mubr.msk.f32.vlgmr.msra.gmra.mxu0 %vm177_vm0, %v164_v20 }
 0x256   :  { %v283_v22 = vpop.f32.mrf.mxu0 }
 0x257   :  { %v256_v23 = vadd.f32 %v283_v22, %v175_v21 }
 0x258   :  { %v250_v25 = vpop.f32.mrf.mxu0 }
 0x259   :  { %260 = vst [vmem:[%s427_s6 + $0x8] sm:$0xff] %v256_v23  ;;  %v251_v26 = vadd.f32 %v250_v25, %v170_v24 }
 0x25b   :  { %259 = vst [vmem:[%s427_s6] sm:$0xff] %v251_v26 }

</bundles_post_ra>
